<compile_context>
chip_gen: v5e
topology: v5e:2x2
jax: 0.10.0
libtpu: 0.0.40
codegen_flags: <defaults>
</compile_context>

<pallas_src>
import numpy as np
import jax
import jax.numpy as jnp
from jax.experimental import pallas as pl
from jax.experimental.pallas import tpu as pltpu

# ---------------- module hyper-parameters (small, self-consistent) ----------
INPUT_DIM = 4          # input_dim
WINDOW_SIZE = 128      # window_size
EMBEDDING_DIM = 32     # embedding_dim
KERNEL_SIZE = 3        # kernel_size
N_CHANNELS = (8, 16, 16)
CONV_STRIDE = 2        # conv_stride
POOL_KERNEL = 2        # pool_kernel

BATCH = 16             # total batch
TILE_B = 16            # samples per grid step -> grid = (BATCH // TILE_B,) = (1,)

assert POOL_KERNEL in (1, 2), "pair-max pooling below assumes pool_kernel <= 2"
assert BATCH % TILE_B == 0


def _update_L(L, kernel_size, stride):
    assert L >= kernel_size
    return int((L - (kernel_size - 1) - 1) / stride + 1)


def _layer_lengths():
    L = WINDOW_SIZE
    out = []
    for _ in range(3):
        Lc = _update_L(L, KERNEL_SIZE, CONV_STRIDE)                     # after conv
        Lp = _update_L(Lc, POOL_KERNEL, POOL_KERNEL) if POOL_KERNEL > 1 else Lc
        out.append((Lc, Lp))
        L = Lp
    return out


LAYER_L = _layer_lengths()         # [(63, 31), (15, 7), (3, 1)]
FINAL_L = LAYER_L[-1][1]
FC_IN = N_CHANNELS[-1] * FINAL_L   # 16
FLAT_IN = INPUT_DIM * WINDOW_SIZE  # 512


# ---------------------------- Pallas kernel ---------------------------------
def _layer(h, m_ref, b_ref):
    """One conv+bias+ReLU(+pair-max-pool) layer for a (TB, flat_in) tile."""
    y = jnp.dot(h.astype(m_ref.dtype), m_ref[...],
                preferred_element_type=jnp.float32) + b_ref[...]
    y = jnp.maximum(y, 0.0)
    if POOL_KERNEL > 1:
        # maxpool(2): bring y[:, i+1] to lane i (positive shift n-1 == roll -1)
        # and take the pair max in place; the even-index decimation is folded
        # into the next layer's dense matrix, so never-read lanes are harmless.
        n = y.shape[-1]
        y = jnp.maximum(y, pltpu.roll(y, shift=n - 1, axis=1))
    return y


def cnn_kernel(x_ref, m1_ref, b1_ref, m2_ref, b2_ref, m3_ref, b3_ref,
               mfc_ref, bfc_ref, out_ref):
    h = x_ref[...]                                   # (TB, W*D) f32
    h = _layer(h, m1_ref, b1_ref)
    h = _layer(h, m2_ref, b2_ref)
    h = _layer(h, m3_ref, b3_ref)
    out = jnp.dot(h.astype(mfc_ref.dtype), mfc_ref[...],
                  preferred_element_type=jnp.float32) + bfc_ref[...]
    out_ref[...] = out.astype(out_ref.dtype)         # (TB, E)


def cnn_forward(x, packed, *, tile_b=TILE_B):
    """x: (B, W, D) float32 -> (B, embedding_dim) float32."""
    m1, b1f, m2, b2f, m3, b3f, mfc, bfcf = packed
    B = x.shape[0]
    assert B % tile_b == 0

    # Row-major (B, W, D) -> (B, W*D) is a free view; the PyTorch transpose is
    # folded into M1's row indexing, so no standalone XLA transpose is needed.
    x_flat = x.reshape(B, FLAT_IN)

    full = lambda a: pl.BlockSpec(a.shape, lambda i: (0,) * a.ndim)

    mats = (m1, m2, m3, mfc)
    flops = 2 * B * sum(int(m.shape[0]) * int(m.shape[1]) for m in mats)
    bytes_accessed = int(
        int(x_flat.size) * x_flat.dtype.itemsize
        + sum(int(p.size) * p.dtype.itemsize for p in packed)
        + B * EMBEDDING_DIM * 4)

    return pl.pallas_call(
        cnn_kernel,
        out_shape=jax.ShapeDtypeStruct((B, EMBEDDING_DIM), jnp.float32),
        grid_spec=pltpu.PrefetchScalarGridSpec(
            num_scalar_prefetch=0,
            grid=(B // tile_b,),                      # = (1,): whole batch/step
            in_specs=[
                pl.BlockSpec((tile_b, FLAT_IN), lambda i: (i, 0)),
                full(m1), full(b1f), full(m2), full(b2f),
                full(m3), full(b3f), full(mfc), full(bfcf),
            ],
            out_specs=pl.BlockSpec((tile_b, EMBEDDING_DIM), lambda i: (i, 0)),
        ),
        compiler_params=pltpu.CompilerParams(
            dimension_semantics=("arbitrary",)),      # no megacore split
        cost_estimate=pl.CostEstimate(flops=flops, transcendentals=0,
                                      bytes_accessed=bytes_accessed),
    )(x_flat, m1, b1f, m2, b2f, m3, b3f, mfc, bfcf)


# --------------------- host-side parameter re-layout -------------------------
def pack_params(params):
    """Fold conv weights (+stride, +input transpose, +pool decimation of the
    previous layer) and the FC weights into dense matrices acting on flattened
    per-sample vectors. Weight matrices are returned in bf16, biases in f32."""
    w1, b1, w2, b2, w3, b3, fc_w, fc_b = [np.asarray(p, np.float32) for p in params]

    mats = []
    # Layer-1 input: x is (W, D) row-major per sample -> row index = t*D + c
    # (this folds the PyTorch x.transpose(1, 2) into M1).
    n_rows = FLAT_IN
    row_of = lambda c, t: t * INPUT_DIM + c
    L_in = WINDOW_SIZE

    for w, b in ((w1, b1), (w2, b2), (w3, b3)):
        C_out, C_in, K = w.shape
        L_out = (L_in - K) // CONV_STRIDE + 1
        M = np.zeros((n_rows, C_out * L_out), np.float32)
        for o in range(C_out):
            for l in range(L_out):
                col = o * L_out + l
                for c in range(C_in):
                    for kk in range(K):
                        M[row_of(c, CONV_STRIDE * l + kk), col] += w[o, c, kk]
        bf = np.repeat(b, L_out)[None, :].astype(np.float32)
        mats += [M, bf]

        if POOL_KERNEL > 1:
            # Kernel pools in place via roll: lane c*L_out + t holds
            # max(y[t], y[t+1]) for channel c.  Pooled element (c, j) is read
            # at lane c*L_out + 2*j (always an even t < L_out-1, so it never
            # crosses a channel boundary).  Row count stays C_out*L_out so all
            # matmul K dims remain multiples of 8; never-read rows stay zero.
            n_rows = C_out * L_out
            row_of = lambda c, j, Lc=L_out: c * Lc + POOL_KERNEL * j
            L_in = (L_out - POOL_KERNEL) // POOL_KERNEL + 1
        else:
            n_rows = C_out * L_out
            row_of = lambda c, j, Lc=L_out: c * Lc + j
            L_in = L_out

    # FC: PyTorch x.view(B, -1) flattens (C, L_pooled) row-major -> c*L_pooled + j
    L_pooled = L_in
    Mfc = np.zeros((n_rows, EMBEDDING_DIM), np.float32)
    for c in range(N_CHANNELS[-1]):
        for j in range(L_pooled):
            Mfc[row_of(c, j), :] += fc_w[:, c * L_pooled + j]
    bfcf = fc_b[None, :].astype(np.float32)
    mats += [Mfc, bfcf]

    out = []
    for i, m in enumerate(mats):
        # even entries are weight matrices (bf16), odd entries are biases (f32)
        out.append(jnp.asarray(m, jnp.bfloat16 if i % 2 == 0 else jnp.float32))
    return tuple(out)


# ---------------------------- parameters & reference -------------------------
def make_params(key):
    ks = jax.random.split(key, 8)

    def u(k, shape, fan_in):
        bound = 1.0 / jnp.sqrt(fan_in)
        return jax.random.uniform(k, shape, jnp.float32, -bound, bound)

    w1 = u(ks[0], (N_CHANNELS[0], INPUT_DIM, KERNEL_SIZE), INPUT_DIM * KERNEL_SIZE)
    b1 = u(ks[1], (N_CHANNELS[0],), INPUT_DIM * KERNEL_SIZE)
    w2 = u(ks[2], (N_CHANNELS[1], N_CHANNELS[0], KERNEL_SIZE), N_CHANNELS[0] * KERNEL_SIZE)
    b2 = u(ks[3], (N_CHANNELS[1],), N_CHANNELS[0] * KERNEL_SIZE)
    w3 = u(ks[4], (N_CHANNELS[2], N_CHANNELS[1], KERNEL_SIZE), N_CHANNELS[1] * KERNEL_SIZE)
    b3 = u(ks[5], (N_CHANNELS[2],), N_CHANNELS[1] * KERNEL_SIZE)
    fc_w = u(ks[6], (EMBEDDING_DIM, FC_IN), FC_IN)   # PyTorch Linear layout (E, fc_in)
    fc_b = u(ks[7], (EMBEDDING_DIM,), FC_IN)
    return w1, b1, w2, b2, w3, b3, fc_w, fc_b


def ref_forward(x, params):
    """Pure-JAX reference replicating the PyTorch forward (full f32)."""
    w1, b1, w2, b2, w3, b3, fc_w, fc_b = params
    h = jnp.transpose(x, (0, 2, 1))                  # (B, C, L) == x.transpose(1, 2)

    def conv(h, w, b, stride):
        y = jax.lax.conv_general_dilated(
            h, w, (stride,), "VALID",
            dimension_numbers=("NCH", "OIH", "NCH"))
        return y + b[None, :, None]

    def pool(h, p):
        B, C, L = h.shape
        Lo = L // p
        return jnp.max(h[:, :, :p * Lo].reshape(B, C, Lo, p), axis=-1)

    for (w, b) in ((w1, b1), (w2, b2), (w3, b3)):
        h = jnp.maximum(conv(h, w, b, CONV_STRIDE), 0.0)
        if POOL_KERNEL > 1:
            h = pool(h, POOL_KERNEL)
    flat = h.reshape(h.shape[0], -1)
    return flat @ fc_w.T + fc_b[None, :]


# ----------------------------------- main ------------------------------------
if __name__ == "__main__":
    key = jax.random.PRNGKey(0)
    kx, kp = jax.random.split(key)
    x = jax.random.normal(kx, (BATCH, WINDOW_SIZE, INPUT_DIM), jnp.float32)
    params = make_params(kp)
    packed = pack_params(params)

    out = cnn_forward(x, packed)
    out = jax.block_until_ready(out)

    ref = ref_forward(x, params)
    assert out.shape == (BATCH, EMBEDDING_DIM), out.shape
    max_err = float(jnp.max(jnp.abs(out - ref)))
    # Tolerance loosened vs. the pure-f32 version because weight matrices are
    # stored/multiplied in bf16 (f32 accumulation); typical max-abs error is
    # a few 1e-3 against the f32 reference.
    assert jnp.allclose(out, ref, atol=1e-2, rtol=1e-2), (
        "mismatch vs reference, max abs err:", max_err)

    print("KERNEL_OK")
</pallas_src>

<mosaic_0001>
module attributes {stable_mosaic.version = 11 : i64} {
  func.func @cnn_kernel(%arg0: i32, %arg1: memref<16x512xf32, #tpu.memory_space<vmem>>, %arg2: memref<512x504xbf16, #tpu.memory_space<vmem>>, %arg3: memref<1x504xf32, #tpu.memory_space<vmem>>, %arg4: memref<504x240xbf16, #tpu.memory_space<vmem>>, %arg5: memref<1x240xf32, #tpu.memory_space<vmem>>, %arg6: memref<240x48xbf16, #tpu.memory_space<vmem>>, %arg7: memref<1x48xf32, #tpu.memory_space<vmem>>, %arg8: memref<48x32xbf16, #tpu.memory_space<vmem>>, %arg9: memref<1x32xf32, #tpu.memory_space<vmem>>, %arg10: memref<16x32xf32, #tpu.memory_space<vmem>>) attributes {dimension_semantics = [#tpu.dimension_semantics<arbitrary>], iteration_bounds = array<i64: 1>, scalar_prefetch = 0 : i64, scratch_operands = 0 : i64, tpu.core_type = #tpu.core_type<tc>, window_params = [{transform_indices = @transform_0, window_bounds = array<i64: 16, 512>}, {pipeline_mode = #tpu.pipeline_mode<synchronous>, transform_indices = @transform_1, window_bounds = array<i64: 512, 504>}, {pipeline_mode = #tpu.pipeline_mode<synchronous>, transform_indices = @transform_2, window_bounds = array<i64: 1, 504>}, {pipeline_mode = #tpu.pipeline_mode<synchronous>, transform_indices = @transform_3, window_bounds = array<i64: 504, 240>}, {pipeline_mode = #tpu.pipeline_mode<synchronous>, transform_indices = @transform_4, window_bounds = array<i64: 1, 240>}, {pipeline_mode = #tpu.pipeline_mode<synchronous>, transform_indices = @transform_5, window_bounds = array<i64: 240, 48>}, {pipeline_mode = #tpu.pipeline_mode<synchronous>, transform_indices = @transform_6, window_bounds = array<i64: 1, 48>}, {pipeline_mode = #tpu.pipeline_mode<synchronous>, transform_indices = @transform_7, window_bounds = array<i64: 48, 32>}, {pipeline_mode = #tpu.pipeline_mode<synchronous>, transform_indices = @transform_8, window_bounds = array<i64: 1, 32>}, {transform_indices = @transform_9, window_bounds = array<i64: 16, 32>}]} {
    %c0 = arith.constant 0 : index
    %c0_0 = arith.constant 0 : index
    %0 = vector.load %arg1[%c0, %c0_0] : memref<16x512xf32, #tpu.memory_space<vmem>>, vector<16x512xf32>
    %1 = arith.truncf %0 : vector<16x512xf32> to vector<16x512xbf16>
    %c0_1 = arith.constant 0 : index
    %c0_2 = arith.constant 0 : index
    %2 = vector.load %arg2[%c0_1, %c0_2] : memref<512x504xbf16, #tpu.memory_space<vmem>>, vector<512x504xbf16>
    %cst = arith.constant dense<0.000000e+00> : vector<16x504xf32>
    %3 = tpu.matmul %1, %2, %cst {dimension_numbers = #tpu.dot_dimension_numbers<[1], [0], [0], [1], [0, 0, 1, 1], [], []>} : vector<16x512xbf16>, vector<512x504xbf16>, vector<16x504xf32> -> vector<16x504xf32>
    %c0_3 = arith.constant 0 : index
    %c0_4 = arith.constant 0 : index
    %4 = vector.load %arg3[%c0_3, %c0_4] : memref<1x504xf32, #tpu.memory_space<vmem>>, vector<1x504xf32>
    %5 = vector.broadcast %4 : vector<1x504xf32> to vector<16x504xf32>
    %6 = arith.addf %3, %5 : vector<16x504xf32>
    %cst_5 = arith.constant 0.000000e+00 : f32
    %7 = vector.broadcast %cst_5 : f32 to vector<16x504xf32>
    %8 = arith.maximumf %6, %7 : vector<16x504xf32>
    %c503_i32 = arith.constant 503 : i32
    %9 = tpu.dynamic_rotate %8 by %c503_i32 dim 1 : vector<16x504xf32>, i32 -> vector<16x504xf32>
    %10 = arith.maximumf %8, %9 : vector<16x504xf32>
    %11 = arith.truncf %10 : vector<16x504xf32> to vector<16x504xbf16>
    %c0_6 = arith.constant 0 : index
    %c0_7 = arith.constant 0 : index
    %12 = vector.load %arg4[%c0_6, %c0_7] : memref<504x240xbf16, #tpu.memory_space<vmem>>, vector<504x240xbf16>
    %cst_8 = arith.constant dense<0.000000e+00> : vector<16x240xf32>
    %13 = tpu.matmul %11, %12, %cst_8 {dimension_numbers = #tpu.dot_dimension_numbers<[1], [0], [0], [1], [0, 0, 1, 1], [], []>} : vector<16x504xbf16>, vector<504x240xbf16>, vector<16x240xf32> -> vector<16x240xf32>
    %c0_9 = arith.constant 0 : index
    %c0_10 = arith.constant 0 : index
    %14 = vector.load %arg5[%c0_9, %c0_10] : memref<1x240xf32, #tpu.memory_space<vmem>>, vector<1x240xf32>
    %15 = vector.broadcast %14 : vector<1x240xf32> to vector<16x240xf32>
    %16 = arith.addf %13, %15 : vector<16x240xf32>
    %cst_11 = arith.constant 0.000000e+00 : f32
    %17 = vector.broadcast %cst_11 : f32 to vector<16x240xf32>
    %18 = arith.maximumf %16, %17 : vector<16x240xf32>
    %c239_i32 = arith.constant 239 : i32
    %19 = tpu.dynamic_rotate %18 by %c239_i32 dim 1 : vector<16x240xf32>, i32 -> vector<16x240xf32>
    %20 = arith.maximumf %18, %19 : vector<16x240xf32>
    %21 = arith.truncf %20 : vector<16x240xf32> to vector<16x240xbf16>
    %c0_12 = arith.constant 0 : index
    %c0_13 = arith.constant 0 : index
    %22 = vector.load %arg6[%c0_12, %c0_13] : memref<240x48xbf16, #tpu.memory_space<vmem>>, vector<240x48xbf16>
    %cst_14 = arith.constant dense<0.000000e+00> : vector<16x48xf32>
    %23 = tpu.matmul %21, %22, %cst_14 {dimension_numbers = #tpu.dot_dimension_numbers<[1], [0], [0], [1], [0, 0, 1, 1], [], []>} : vector<16x240xbf16>, vector<240x48xbf16>, vector<16x48xf32> -> vector<16x48xf32>
    %c0_15 = arith.constant 0 : index
    %c0_16 = arith.constant 0 : index
    %24 = vector.load %arg7[%c0_15, %c0_16] : memref<1x48xf32, #tpu.memory_space<vmem>>, vector<1x48xf32>
    %25 = vector.broadcast %24 : vector<1x48xf32> to vector<16x48xf32>
    %26 = arith.addf %23, %25 : vector<16x48xf32>
    %cst_17 = arith.constant 0.000000e+00 : f32
    %27 = vector.broadcast %cst_17 : f32 to vector<16x48xf32>
    %28 = arith.maximumf %26, %27 : vector<16x48xf32>
    %c47_i32 = arith.constant 47 : i32
    %29 = tpu.dynamic_rotate %28 by %c47_i32 dim 1 : vector<16x48xf32>, i32 -> vector<16x48xf32>
    %30 = arith.maximumf %28, %29 : vector<16x48xf32>
    %31 = arith.truncf %30 : vector<16x48xf32> to vector<16x48xbf16>
    %c0_18 = arith.constant 0 : index
    %c0_19 = arith.constant 0 : index
    %32 = vector.load %arg8[%c0_18, %c0_19] : memref<48x32xbf16, #tpu.memory_space<vmem>>, vector<48x32xbf16>
    %cst_20 = arith.constant dense<0.000000e+00> : vector<16x32xf32>
    %33 = tpu.matmul %31, %32, %cst_20 {dimension_numbers = #tpu.dot_dimension_numbers<[1], [0], [0], [1], [0, 0, 1, 1], [], []>} : vector<16x48xbf16>, vector<48x32xbf16>, vector<16x32xf32> -> vector<16x32xf32>
    %c0_21 = arith.constant 0 : index
    %c0_22 = arith.constant 0 : index
    %34 = vector.load %arg9[%c0_21, %c0_22] : memref<1x32xf32, #tpu.memory_space<vmem>>, vector<1x32xf32>
    %35 = vector.broadcast %34 : vector<1x32xf32> to vector<16x32xf32>
    %36 = arith.addf %33, %35 : vector<16x32xf32>
    %c0_23 = arith.constant 0 : index
    %c0_24 = arith.constant 0 : index
    %37 = vector.load %arg10[%c0_23, %c0_24] : memref<16x32xf32, #tpu.memory_space<vmem>>, vector<16x32xf32>
    tpu.vector_store %arg10[%c0_23, %c0_24], %36 {strides = array<i32>} : memref<16x32xf32, #tpu.memory_space<vmem>>, vector<16x32xf32>,
    return
  }
  func.func @transform_0(%arg0: i32) -> (i32, i32) {
    %c0_i32 = arith.constant 0 : i32
    %c0_i32_0 = arith.constant 0 : i32
    return %arg0, %c0_i32 : i32, i32
  }
  func.func @transform_1(%arg0: i32) -> (i32, i32) {
    %c0_i32 = arith.constant 0 : i32
    %c0_i32_0 = arith.constant 0 : i32
    %c0_i32_1 = arith.constant 0 : i32
    return %c0_i32, %c0_i32_0 : i32, i32
  }
  func.func @transform_2(%arg0: i32) -> (i32, i32) {
    %c0_i32 = arith.constant 0 : i32
    %c0_i32_0 = arith.constant 0 : i32
    %c0_i32_1 = arith.constant 0 : i32
    return %c0_i32, %c0_i32_0 : i32, i32
  }
  func.func @transform_3(%arg0: i32) -> (i32, i32) {
    %c0_i32 = arith.constant 0 : i32
    %c0_i32_0 = arith.constant 0 : i32
    %c0_i32_1 = arith.constant 0 : i32
    return %c0_i32, %c0_i32_0 : i32, i32
  }
  func.func @transform_4(%arg0: i32) -> (i32, i32) {
    %c0_i32 = arith.constant 0 : i32
    %c0_i32_0 = arith.constant 0 : i32
    %c0_i32_1 = arith.constant 0 : i32
    return %c0_i32, %c0_i32_0 : i32, i32
  }
  func.func @transform_5(%arg0: i32) -> (i32, i32) {
    %c0_i32 = arith.constant 0 : i32
    %c0_i32_0 = arith.constant 0 : i32
    %c0_i32_1 = arith.constant 0 : i32
    return %c0_i32, %c0_i32_0 : i32, i32
  }
  func.func @transform_6(%arg0: i32) -> (i32, i32) {
    %c0_i32 = arith.constant 0 : i32
    %c0_i32_0 = arith.constant 0 : i32
    %c0_i32_1 = arith.constant 0 : i32
    return %c0_i32, %c0_i32_0 : i32, i32
  }
  func.func @transform_7(%arg0: i32) -> (i32, i32) {
    %c0_i32 = arith.constant 0 : i32
    %c0_i32_0 = arith.constant 0 : i32
    %c0_i32_1 = arith.constant 0 : i32
    return %c0_i32, %c0_i32_0 : i32, i32
  }
  func.func @transform_8(%arg0: i32) -> (i32, i32) {
    %c0_i32 = arith.constant 0 : i32
    %c0_i32_0 = arith.constant 0 : i32
    %c0_i32_1 = arith.constant 0 : i32
    return %c0_i32, %c0_i32_0 : i32, i32
  }
  func.func @transform_9(%arg0: i32) -> (i32, i32) {
    %c0_i32 = arith.constant 0 : i32
    %c0_i32_0 = arith.constant 0 : i32
    return %arg0, %c0_i32 : i32, i32
  }
}

</mosaic_0001>

<bundles_post_ra>
// kernel: tpu_custom_call.1
= control target key start
LH: loop header
LB: loop body
LE: loop exit
PB: predicated region body
PF: predicated region fallthrough
CT: control target
= control target key end

     0   :  { %s4458_s0 = inlined_call_operand.vmem [shape: f32[16,512], index: 0, kind: input, shape index: {}]   ;;  %s4459_s1 = inlined_call_operand.vmem [shape: bf16[512,504], index: 1, kind: input, shape index: {}]   ;;  %s4460_s2 = inlined_call_operand.vmem [shape: f32[1,504], index: 2, kind: input, shape index: {}]   ;;  %s4461_s3 = inlined_call_operand.vmem [shape: bf16[504,240], index: 3, kind: input, shape index: {}]   ;;  %s4462_s4 = inlined_call_operand.vmem [shape: f32[1,240], index: 4, kind: input, shape index: {}]   ;;  %s4463_s5 = inlined_call_operand.vmem [shape: bf16[240,48], index: 5, kind: input, shape index: {}]   ;;  %s4464_s6 = inlined_call_operand.vmem [shape: f32[1,48], index: 6, kind: input, shape index: {}]   ;;  %s4465_s7 = inlined_call_operand.vmem [shape: bf16[48,32], index: 7, kind: input, shape index: {}]   ;;  %s4466_s8 = inlined_call_operand.vmem [shape: f32[1,32], index: 8, kind: input, shape index: {}]   ;;  %s4467_s9 = inlined_call_operand.hbm [shape: f32[16,32], index: 9, kind: output, shape index: {}]  }
   0x1   :  { %v2019_v0 = vld [vmem:[%s4459_s1 + $0xe0] sm:$0xf]  ;;  %v2771_v1 = vld [vmem:[%s4459_s1 + $0xec] sm:$0xf0] }
   0x2   :  { %v2147_v2 = vld [vmem:[%s4459_s1 + $0x1e0] sm:$0xf]  ;;  %v2020_v3 = vor.u32 %v2771_v1, %v2019_v0  ;;  %v2803_v4 = vld [vmem:[%s4459_s1 + $0x1ec] sm:$0xf0] }
   0x3   :  { %v2275_v5 = vld [vmem:[%s4459_s1 + $0x2e0] sm:$0xf]  ;;  %v2835_v6 = vld [vmem:[%s4459_s1 + $0x2ec] sm:$0xf0]  ;;  %v2148_v7 = vor.u32 %v2803_v4, %v2147_v2 }
   0x4   :  { %v2276_v8 = vor.u32 %v2835_v6, %v2275_v5  ;;  %v2403_v9 = vld [vmem:[%s4459_s1 + $0x3e0] sm:$0xf]  ;;  %v2867_v10 = vld [vmem:[%s4459_s1 + $0x3ec] sm:$0xf0]  ;;  %824 = vmatpush.bf16.msra.mxu0 %v2020_v3 }
   0x5   :  { %v2003_v11 = vld [vmem:[%s4459_s1 + $0xc0] sm:$0xf]  ;;  %v2404_v12 = vor.u32 %v2867_v10, %v2403_v9  ;;  %v2767_v13 = vld [vmem:[%s4459_s1 + $0xcc] sm:$0xf0]  ;;  %838 = vmatpush.bf16.msra.mxu1 %v2148_v7 }
   0x6   :  { %v2131_v14 = vld [vmem:[%s4459_s1 + $0x1c0] sm:$0xf]  ;;  %v2799_v15 = vld [vmem:[%s4459_s1 + $0x1cc] sm:$0xf0]  ;;  %852 = vmatpush.bf16.msra.mxu2 %v2276_v8  ;;  %v2004_v16 = vor.u32 %v2767_v13, %v2003_v11 }
   0x7   :  { %v2132_v17 = vor.u32 %v2799_v15, %v2131_v14  ;;  %v2259_v18 = vld [vmem:[%s4459_s1 + $0x2c0] sm:$0xf]  ;;  %v2831_v19 = vld [vmem:[%s4459_s1 + $0x2cc] sm:$0xf0]  ;;  %866 = vmatpush.bf16.msra.mxu3 %v2404_v12 }
   0x8   :  { %v2387_v20 = vld [vmem:[%s4459_s1 + $0x3c0] sm:$0xf]  ;;  %v2260_v21 = vor.u32 %v2831_v19, %v2259_v18  ;;  %v2863_v22 = vld [vmem:[%s4459_s1 + $0x3cc] sm:$0xf0]  ;;  %825 = vmatpush.bf16.msra.mxu0 %v2004_v16 }
   0x9   :  { %v1987_v23 = vld [vmem:[%s4459_s1 + $0xa0] sm:$0xf]  ;;  %v2763_v24 = vld [vmem:[%s4459_s1 + $0xac] sm:$0xf0]  ;;  %v2388_v25 = vor.u32 %v2863_v22, %v2387_v20  ;;  %839 = vmatpush.bf16.msra.mxu1 %v2132_v17 }
   0xa   :  { %v2115_v26 = vld [vmem:[%s4459_s1 + $0x1a0] sm:$0xf]  ;;  %v2795_v27 = vld [vmem:[%s4459_s1 + $0x1ac] sm:$0xf0]  ;;  %v1988_v29 = vor.u32 %v2763_v24, %v1987_v23  ;;  %853 = vmatpush.bf16.msra.mxu2 %v2260_v21 }
   0xb   :  { %v2243_v28 = vld [vmem:[%s4459_s1 + $0x2a0] sm:$0xf]  ;;  %v2827_v30 = vld [vmem:[%s4459_s1 + $0x2ac] sm:$0xf0]  ;;  %v2116_v33 = vor.u32 %v2795_v27, %v2115_v26  ;;  %867 = vmatpush.bf16.msra.mxu3 %v2388_v25 }
   0xc   :  { %v2371_v31 = vld [vmem:[%s4459_s1 + $0x3a0] sm:$0xf]  ;;  %v2859_v32 = vld [vmem:[%s4459_s1 + $0x3ac] sm:$0xf0]  ;;  %v2244_v34 = vor.u32 %v2827_v30, %v2243_v28  ;;  %826 = vmatpush.bf16.msra.mxu0 %v1988_v29  ;;  %v2833_v28 = vld [vmem:[%s4459_s1 + $0x2e4] sm:$0xf] }
   0xd   :  { %v1971_v35 = vld [vmem:[%s4459_s1 + $0x80] sm:$0xf]  ;;  %v2759_v36 = vld [vmem:[%s4459_s1 + $0x8c] sm:$0xf0]  ;;  %v2372_v38 = vor.u32 %v2859_v32, %v2371_v31  ;;  %840 = vmatpush.bf16.msra.mxu1 %v2116_v33  ;;  %v2277_v29 = vld [vmem:[%s4459_s1 + $0x2f0] sm:$0xf0] }
   0xe   :  { %v2099_v37 = vld [vmem:[%s4459_s1 + $0x180] sm:$0xf]  ;;  %v2791_v39 = vld [vmem:[%s4459_s1 + $0x18c] sm:$0xf0]  ;;  %v1972_v44 = vor.u32 %v2759_v36, %v1971_v35  ;;  %854 = vmatpush.bf16.msra.mxu2 %v2244_v34  ;;  %v35_v32 = vld [vmem:[%s4458_s0 + $0x8] sm:$0xff] }
   0xf   :  { %v2227_v40 = vld [vmem:[%s4459_s1 + $0x280] sm:$0xf]  ;;  %v2823_v41 = vld [vmem:[%s4459_s1 + $0x28c] sm:$0xf0]  ;;  %v2100_v45 = vor.u32 %v2791_v39, %v2099_v37  ;;  %868 = vmatpush.bf16.msra.mxu3 %v2372_v38  ;;  %v39_v33 = vld [vmem:[%s4458_s0 + $0x28] sm:$0xff] }
  0x10   :  { %v2355_v42 = vld [vmem:[%s4459_s1 + $0x380] sm:$0xf]  ;;  %v2855_v43 = vld [vmem:[%s4459_s1 + $0x38c] sm:$0xf0]  ;;  %v2228_v46 = vor.u32 %v2823_v41, %v2227_v40  ;;  %827 = vmatpush.bf16.msra.mxu0 %v1972_v44  ;;  %v2865_v36 = vld [vmem:[%s4459_s1 + $0x3e4] sm:$0xf]  ;;  %v2280_v44 = vor.u32 %v2833_v28, %v2277_v29 }
  0x11   :  { %v1955_v47 = vld [vmem:[%s4459_s1 + $0x60] sm:$0xf]  ;;  %v2755_v48 = vld [vmem:[%s4459_s1 + $0x6c] sm:$0xf0]  ;;  %v2356_v50 = vor.u32 %v2855_v43, %v2355_v42  ;;  %841 = vmatpush.bf16.msra.mxu1 %v2100_v45  ;;  %v2405_v37 = vld [vmem:[%s4459_s1 + $0x3f0] sm:$0xf0] }
  0x12   :  { %v2083_v49 = vld [vmem:[%s4459_s1 + $0x160] sm:$0xf]  ;;  %v2787_v51 = vld [vmem:[%s4459_s1 + $0x16c] sm:$0xf0]  ;;  %v1956_v56 = vor.u32 %v2755_v48, %v1955_v47  ;;  %855 = vmatpush.bf16.msra.mxu2 %v2228_v46  ;;  %v37_v41 = vld [vmem:[%s4458_s0 + $0x18] sm:$0xff] }
  0x13   :  { %v2211_v52 = vld [vmem:[%s4459_s1 + $0x260] sm:$0xf]  ;;  %v2819_v53 = vld [vmem:[%s4459_s1 + $0x26c] sm:$0xf0]  ;;  %v2084_v57 = vor.u32 %v2787_v51, %v2083_v49  ;;  %869 = vmatpush.bf16.msra.mxu3 %v2356_v50  ;;  %v41_v42 = vld [vmem:[%s4458_s0 + $0x38] sm:$0xff]  ;;  %v2408_v49 = vor.u32 %v2865_v36, %v2405_v37 }
  0x14   :  { %v2339_v54 = vld [vmem:[%s4459_s1 + $0x360] sm:$0xf]  ;;  %v2851_v55 = vld [vmem:[%s4459_s1 + $0x36c] sm:$0xf0]  ;;  %v2212_v58 = vor.u32 %v2819_v53, %v2211_v52  ;;  %828 = vmatpush.bf16.msra.mxu0 %v1956_v56  ;;  %v2769_v45 = vld [vmem:[%s4459_s1 + $0xe4] sm:$0xf]  ;;  %v3344_v53 = vpack.c.bf16 %v39_v33, %v35_v32 }
  0x15   :  { %v1939_v59 = vld [vmem:[%s4459_s1 + $0x40] sm:$0xf]  ;;  %v2751_v60 = vld [vmem:[%s4459_s1 + $0x4c] sm:$0xf0]  ;;  %v2340_v62 = vor.u32 %v2851_v55, %v2339_v54  ;;  %842 = vmatpush.bf16.msra.mxu1 %v2084_v57  ;;  %v2021_v46 = vld [vmem:[%s4459_s1 + $0xf0] sm:$0xf0]  ;;  %v3354_v57 = vpack.c.bf16 %v41_v42, %v37_v41 }
  0x16   :  { %v2067_v61 = vld [vmem:[%s4459_s1 + $0x140] sm:$0xf]  ;;  %v2783_v63 = vld [vmem:[%s4459_s1 + $0x14c] sm:$0xf0]  ;;  %v1940_v4 = vor.u32 %v2751_v60, %v1939_v59  ;;  %856 = vmatpush.bf16.msra.mxu2 %v2212_v58  ;;  %v2801_v47 = vld [vmem:[%s4459_s1 + $0x1e4] sm:$0xf]  ;;  %v2024_v58 = vor.u32 %v2769_v45, %v2021_v46 }
  0x17   :  { %v2195_v0 = vld [vmem:[%s4459_s1 + $0x240] sm:$0xf]  ;;  %v2815_v1 = vld [vmem:[%s4459_s1 + $0x24c] sm:$0xf0]  ;;  %v2068_v6 = vor.u32 %v2783_v63, %v2067_v61  ;;  %870 = vmatpush.bf16.msra.mxu3 %v2340_v62  ;;  %v2149_v50 = vld [vmem:[%s4459_s1 + $0x1f0] sm:$0xf0] }
  0x18   :  { %v2323_v2 = vld [vmem:[%s4459_s1 + $0x340] sm:$0xf]  ;;  %v2847_v3 = vld [vmem:[%s4459_s1 + $0x34c] sm:$0xf0]  ;;  %v2196_v7 = vor.u32 %v2815_v1, %v2195_v0  ;;  %829 = vmatpush.bf16.msra.mxu0 %v1940_v4  ;;  %v2829_v51 = vld [vmem:[%s4459_s1 + $0x2c4] sm:$0xf]  ;;  %v2152_v59 = vor.u32 %v2801_v47, %v2149_v50 }
  0x19   :  { %v1923_v5 = vld [vmem:[%s4459_s1 + $0x20] sm:$0xf]  ;;  %v2747_v8 = vld [vmem:[%s4459_s1 + $0x2c] sm:$0xf0]  ;;  %v2324_v11 = vor.u32 %v2847_v3, %v2323_v2  ;;  %843 = vmatpush.bf16.msra.mxu1 %v2068_v6  ;;  %v2261_v52 = vld [vmem:[%s4459_s1 + $0x2d0] sm:$0xf0] }
  0x1a   :  { %v2051_v9 = vld [vmem:[%s4459_s1 + $0x120] sm:$0xf]  ;;  %v2779_v10 = vld [vmem:[%s4459_s1 + $0x12c] sm:$0xf0]  ;;  %v1924_v18 = vor.u32 %v2747_v8, %v1923_v5  ;;  %857 = vmatpush.bf16.msra.mxu2 %v2196_v7  ;;  %v2861_v55 = vld [vmem:[%s4459_s1 + $0x3c4] sm:$0xf]  ;;  %v2264_v60 = vor.u32 %v2829_v51, %v2261_v52 }
  0x1b   :  { %v2179_v12 = vld [vmem:[%s4459_s1 + $0x220] sm:$0xf]  ;;  %v2811_v13 = vld [vmem:[%s4459_s1 + $0x22c] sm:$0xf0]  ;;  %v2052_v22 = vor.u32 %v2779_v10, %v2051_v9  ;;  %871 = vmatpush.bf16.msra.mxu3 %v2324_v11  ;;  %v2389_v56 = vld [vmem:[%s4459_s1 + $0x3d0] sm:$0xf0] }
  0x1c   :  { %v2307_v14 = vld [vmem:[%s4459_s1 + $0x320] sm:$0xf]  ;;  %v2843_v15 = vld [vmem:[%s4459_s1 + $0x32c] sm:$0xf0]  ;;  %v2180_v23 = vor.u32 %v2811_v13, %v2179_v12  ;;  %830 = vmatpush.bf16.msra.mxu0 %v1924_v18  ;;  %v2765_v61 = vld [vmem:[%s4459_s1 + $0xc4] sm:$0xf]  ;;  %v2392_v0 = vor.u32 %v2861_v55, %v2389_v56 }
  0x1d   :  { %v1907_v16 = vld [vmem:[%s4459_s1] sm:$0xf]  ;;  %v2743_v17 = vld [vmem:[%s4459_s1 + $0xc] sm:$0xf0]  ;;  %v2308_v27 = vor.u32 %v2843_v15, %v2307_v14  ;;  %844 = vmatpush.bf16.msra.mxu1 %v2052_v22  ;;  %v2005_v62 = vld [vmem:[%s4459_s1 + $0xd0] sm:$0xf0] }
  0x1e   :  { %v2035_v19 = vld [vmem:[%s4459_s1 + $0x100] sm:$0xf]  ;;  %v2775_v20 = vld [vmem:[%s4459_s1 + $0x10c] sm:$0xf0]  ;;  %v1908_v34 = vor.u32 %v2743_v17, %v1907_v16  ;;  %858 = vmatpush.bf16.msra.mxu2 %v2180_v23  ;;  %v2797_v63 = vld [vmem:[%s4459_s1 + $0x1c4] sm:$0xf]  ;;  %v2008_v6 = vor.u32 %v2765_v61, %v2005_v62 }
  0x1f   :  { %v2163_v21 = vld [vmem:[%s4459_s1 + $0x200] sm:$0xf]  ;;  %v2807_v24 = vld [vmem:[%s4459_s1 + $0x20c] sm:$0xf0]  ;;  %v2036_v38 = vor.u32 %v2775_v20, %v2035_v19  ;;  %872 = vmatpush.bf16.msra.mxu3 %v2308_v27  ;;  %v2133_v1 = vld [vmem:[%s4459_s1 + $0x1d0] sm:$0xf0] }
  0x20   :  { %v2291_v25 = vld [vmem:[%s4459_s1 + $0x300] sm:$0xf]  ;;  %v2839_v26 = vld [vmem:[%s4459_s1 + $0x30c] sm:$0xf0]  ;;  %v2164_v39 = vor.u32 %v2807_v24, %v2163_v21  ;;  %831 = vmatpush.bf16.msra.mxu0 %v1908_v34  ;;  %v2825_v2 = vld [vmem:[%s4459_s1 + $0x2a4] sm:$0xf]  ;;  %v2136_v7 = vor.u32 %v2797_v63, %v2133_v1 }
  0x21   :  { %v34_v30 = vld [vmem:[%s4458_s0] sm:$0xff]  ;;  %v36_v35 = vld [vmem:[%s4458_s0 + $0x10] sm:$0xff]  ;;  %v2292_v43 = vor.u32 %v2839_v26, %v2291_v25  ;;  %845 = vmatpush.bf16.msra.mxu1 %v2036_v38 }
  0x22   :  { %v38_v31 = vld [vmem:[%s4458_s0 + $0x20] sm:$0xff]  ;;  %v40_v40 = vld [vmem:[%s4458_s0 + $0x30] sm:$0xff]  ;;  %859 = vmatpush.bf16.msra.mxu2 %v2164_v39 }
  0x23   :  { %v3333_v48 = vpack.c.bf16 %v38_v31, %v34_v30  ;;  %v3346_v54 = vpack.c.bf16 %v40_v40, %v36_v35  ;;  %873 = vmatpush.bf16.msra.mxu3 %v2292_v43  ;;  %v2245_v3 = vld [vmem:[%s4459_s1 + $0x2b0] sm:$0xf0]  ;;  %v2857_v4 = vld [vmem:[%s4459_s1 + $0x3a4] sm:$0xf] }
  0x24   :  { %846 = vmatmul.bf16.vlgmr.msra.gmra.mxu1 %v3344_v53  ;;  %v2373_v5 = vld [vmem:[%s4459_s1 + $0x3b0] sm:$0xf0]  ;;  %880 = vmatpush.bf16.msrb.mxu0 %v2024_v58  ;;  %v2248_v8 = vor.u32 %v2825_v2, %v2245_v3  ;;  %v2761_v9 = vld [vmem:[%s4459_s1 + $0xa4] sm:$0xf] }
  0x25   :  { %832 = vmatmul.bf16.vlgmr.msra.gmra.mxu0 %v3333_v48  ;;  %860 = vmatmul.bf16.vlgmr.msra.gmra.mxu2 %v3346_v54  ;;  %v1989_v10 = vld [vmem:[%s4459_s1 + $0xb0] sm:$0xf0]  ;;  %v2793_v11 = vld [vmem:[%s4459_s1 + $0x1a4] sm:$0xf]  ;;  %v2376_v12 = vor.u32 %v2857_v4, %v2373_v5 }
  0x26   :  { %908 = vmatpush.bf16.msrb.mxu2 %v2280_v44  ;;  %874 = vmatmul.bf16.vlgmr.msra.gmra.mxu3 %v3354_v57  ;;  %v2117_v13 = vld [vmem:[%s4459_s1 + $0x1b0] sm:$0xf0]  ;;  %v2821_v14 = vld [vmem:[%s4459_s1 + $0x284] sm:$0xf]  ;;  %v1992_v18 = vor.u32 %v2761_v9, %v1989_v10  ;;  %v2411_v9 = vld [vmem:[%s4459_s1 + $0x3e8] sm:$0xf] }
  0x27   :  { %922 = vmatpush.bf16.msrb.mxu3 %v2408_v49  ;;  %894 = vmatpush.bf16.msrb.mxu1 %v2152_v59  ;;  %v2229_v15 = vld [vmem:[%s4459_s1 + $0x290] sm:$0xf0]  ;;  %v2853_v16 = vld [vmem:[%s4459_s1 + $0x384] sm:$0xf]  ;;  %v2120_v19 = vor.u32 %v2793_v11, %v2117_v13  ;;  %v2868_v10 = vld [vmem:[%s4459_s1 + $0x3f4] sm:$0xf0] }
  0x28   :  { %v2357_v17 = vld [vmem:[%s4459_s1 + $0x390] sm:$0xf0]  ;;  %881 = vmatpush.bf16.msrb.mxu0 %v2008_v6  ;;  %v2232_v20 = vor.u32 %v2821_v14, %v2229_v15  ;;  %v2757_v21 = vld [vmem:[%s4459_s1 + $0x84] sm:$0xf]  ;;  %v2283_v6 = vld [vmem:[%s4459_s1 + $0x2e8] sm:$0xf] }
  0x29   :  { %v1973_v22 = vld [vmem:[%s4459_s1 + $0x90] sm:$0xf0]  ;;  %v2789_v23 = vld [vmem:[%s4459_s1 + $0x184] sm:$0xf]  ;;  %v2360_v24 = vor.u32 %v2853_v16, %v2357_v17 }
  0x2a   :  { %909 = vmatpush.bf16.msrb.mxu2 %v2264_v60  ;;  %v2101_v25 = vld [vmem:[%s4459_s1 + $0x190] sm:$0xf0]  ;;  %v2817_v26 = vld [vmem:[%s4459_s1 + $0x264] sm:$0xf]  ;;  %v1976_v30 = vor.u32 %v2757_v21, %v1973_v22  ;;  %v2412_v21 = vor.u32 %v2868_v10, %v2411_v9  ;;  %v2155_v22 = vld [vmem:[%s4459_s1 + $0x1e8] sm:$0xf] }
  0x2b   :  { %923 = vmatpush.bf16.msrb.mxu3 %v2392_v0  ;;  %895 = vmatpush.bf16.msrb.mxu1 %v2136_v7  ;;  %v2213_v27 = vld [vmem:[%s4459_s1 + $0x270] sm:$0xf0]  ;;  %v2849_v28 = vld [vmem:[%s4459_s1 + $0x364] sm:$0xf]  ;;  %v2104_v31 = vor.u32 %v2789_v23, %v2101_v25  ;;  %v2836_v7 = vld [vmem:[%s4459_s1 + $0x2f4] sm:$0xf0] }
  0x2c   :  { %v2341_v29 = vld [vmem:[%s4459_s1 + $0x370] sm:$0xf0]  ;;  %882 = vmatpush.bf16.msrb.mxu0 %v1992_v18  ;;  %v2216_v32 = vor.u32 %v2817_v26, %v2213_v27  ;;  %v2753_v33 = vld [vmem:[%s4459_s1 + $0x64] sm:$0xf]  ;;  %v2284_v18 = vor.u32 %v2836_v7, %v2283_v6  ;;  %v2804_v23 = vld [vmem:[%s4459_s1 + $0x1f4] sm:$0xf0] }
  0x2d   :  { %v1957_v34 = vld [vmem:[%s4459_s1 + $0x70] sm:$0xf0]  ;;  %v2785_v35 = vld [vmem:[%s4459_s1 + $0x164] sm:$0xf]  ;;  %v2344_v36 = vor.u32 %v2849_v28, %v2341_v29  ;;  %v2267_v25 = vld [vmem:[%s4459_s1 + $0x2c8] sm:$0xf] }
  0x2e   :  { %910 = vmatpush.bf16.msrb.mxu2 %v2248_v8  ;;  %v2085_v37 = vld [vmem:[%s4459_s1 + $0x170] sm:$0xf0]  ;;  %v2813_v38 = vld [vmem:[%s4459_s1 + $0x244] sm:$0xf]  ;;  %v1960_v42 = vor.u32 %v2753_v33, %v1957_v34  ;;  %v2832_v26 = vld [vmem:[%s4459_s1 + $0x2d4] sm:$0xf0] }
  0x2f   :  { %924 = vmatpush.bf16.msrb.mxu3 %v2376_v12  ;;  %896 = vmatpush.bf16.msrb.mxu1 %v2120_v19  ;;  %v2197_v39 = vld [vmem:[%s4459_s1 + $0x250] sm:$0xf0]  ;;  %v2845_v40 = vld [vmem:[%s4459_s1 + $0x344] sm:$0xf]  ;;  %v2088_v43 = vor.u32 %v2785_v35, %v2085_v37  ;;  %v2027_v19 = vld [vmem:[%s4459_s1 + $0xe8] sm:$0xf]  ;;  %v2268_v33 = vor.u32 %v2832_v26, %v2267_v25 }
  0x30   :  { %v2325_v41 = vld [vmem:[%s4459_s1 + $0x350] sm:$0xf0]  ;;  %883 = vmatpush.bf16.msrb.mxu0 %v1976_v30  ;;  %v2200_v44 = vor.u32 %v2813_v38, %v2197_v39  ;;  %v2749_v45 = vld [vmem:[%s4459_s1 + $0x44] sm:$0xf]  ;;  %v2395_v28 = vld [vmem:[%s4459_s1 + $0x3c8] sm:$0xf] }
  0x31   :  { %v1941_v46 = vld [vmem:[%s4459_s1 + $0x50] sm:$0xf0]  ;;  %v2781_v47 = vld [vmem:[%s4459_s1 + $0x144] sm:$0xf]  ;;  %v2328_v49 = vor.u32 %v2845_v40, %v2325_v41  ;;  %v2864_v29 = vld [vmem:[%s4459_s1 + $0x3d4] sm:$0xf0] }
  0x32   :  { %911 = vmatpush.bf16.msrb.mxu2 %v2232_v20  ;;  %v2069_v50 = vld [vmem:[%s4459_s1 + $0x150] sm:$0xf0]  ;;  %v2809_v51 = vld [vmem:[%s4459_s1 + $0x224] sm:$0xf]  ;;  %v1944_v58 = vor.u32 %v2749_v45, %v1941_v46  ;;  %v2772_v20 = vld [vmem:[%s4459_s1 + $0xf4] sm:$0xf0]  ;;  %v2396_v37 = vor.u32 %v2864_v29, %v2395_v28 }
  0x33   :  { %925 = vmatpush.bf16.msrb.mxu3 %v2360_v24  ;;  %897 = vmatpush.bf16.msrb.mxu1 %v2104_v31  ;;  %v2181_v52 = vld [vmem:[%s4459_s1 + $0x230] sm:$0xf0]  ;;  %v2841_v55 = vld [vmem:[%s4459_s1 + $0x324] sm:$0xf]  ;;  %v2072_v60 = vor.u32 %v2781_v47, %v2069_v50  ;;  %v2028_v30 = vor.u32 %v2772_v20, %v2027_v19  ;;  %v2156_v31 = vor.u32 %v2804_v23, %v2155_v22  ;;  %v2768_v34 = vld [vmem:[%s4459_s1 + $0xd4] sm:$0xf0] }
  0x34   :  { %v2309_v56 = vld [vmem:[%s4459_s1 + $0x330] sm:$0xf0]  ;;  %884 = vmatpush.bf16.msrb.mxu0 %v1960_v42  ;;  %v2745_v59 = vld [vmem:[%s4459_s1 + $0x24] sm:$0xf]  ;;  %v2184_v61 = vor.u32 %v2809_v51, %v2181_v52  ;;  %v2139_v35 = vld [vmem:[%s4459_s1 + $0x1c8] sm:$0xf] }
  0x35   :  { %v1925_v62 = vld [vmem:[%s4459_s1 + $0x30] sm:$0xf0]  ;;  %v2777_v63 = vld [vmem:[%s4459_s1 + $0x124] sm:$0xf]  ;;  %v2312_v1 = vor.u32 %v2841_v55, %v2309_v56  ;;  %v2251_v38 = vld [vmem:[%s4459_s1 + $0x2a8] sm:$0xf] }
  0x36   :  { %912 = vmatpush.bf16.msrb.mxu2 %v2216_v32  ;;  %v2053_v0 = vld [vmem:[%s4459_s1 + $0x130] sm:$0xf0]  ;;  %v2805_v2 = vld [vmem:[%s4459_s1 + $0x204] sm:$0xf]  ;;  %v1928_v8 = vor.u32 %v2745_v59, %v1925_v62  ;;  %v2011_v32 = vld [vmem:[%s4459_s1 + $0xc8] sm:$0xf] }
  0x37   :  { %926 = vmatpush.bf16.msrb.mxu3 %v2344_v36  ;;  %898 = vmatpush.bf16.msrb.mxu1 %v2088_v43  ;;  %v2165_v3 = vld [vmem:[%s4459_s1 + $0x210] sm:$0xf0]  ;;  %v2837_v4 = vld [vmem:[%s4459_s1 + $0x304] sm:$0xf]  ;;  %v2056_v11 = vor.u32 %v2777_v63, %v2053_v0  ;;  %v2800_v36 = vld [vmem:[%s4459_s1 + $0x1d4] sm:$0xf0]  ;;  %v2012_v42 = vor.u32 %v2768_v34, %v2011_v32 }
  0x38   :  { %v2293_v5 = vld [vmem:[%s4459_s1 + $0x310] sm:$0xf0]  ;;  %885 = vmatpush.bf16.msrb.mxu0 %v1944_v58  ;;  %v2168_v12 = vor.u32 %v2805_v2, %v2165_v3  ;;  %v2741_v13 = vld [vmem:[%s4459_s1 + $0x4] sm:$0xf]  ;;  %v2828_v39 = vld [vmem:[%s4459_s1 + $0x2b4] sm:$0xf0]  ;;  %v2140_v43 = vor.u32 %v2800_v36, %v2139_v35 }
  0x39   :  { %v1909_v14 = vld [vmem:[%s4459_s1 + $0x10] sm:$0xf0]  ;;  %v2296_v15 = vor.u32 %v2837_v4, %v2293_v5  ;;  %v2773_v16 = vld [vmem:[%s4459_s1 + $0x104] sm:$0xf]  ;;  %v2379_v40 = vld [vmem:[%s4459_s1 + $0x3a8] sm:$0xf]  ;;  %v2252_v45 = vor.u32 %v2828_v39, %v2251_v38 }
  0x3a   :  { %913 = vmatpush.bf16.msrb.mxu2 %v2200_v44  ;;  %v2037_v17 = vld [vmem:[%s4459_s1 + $0x110] sm:$0xf0]  ;;  %v1912_v24 = vor.u32 %v2741_v13, %v1909_v14  ;;  %v2860_v41 = vld [vmem:[%s4459_s1 + $0x3b4] sm:$0xf0]  ;;  %v1995_v44 = vld [vmem:[%s4459_s1 + $0xa8] sm:$0xf] }
  0x3b   :  { %927 = vmatpush.bf16.msrb.mxu3 %v2328_v49  ;;  %899 = vmatpush.bf16.msrb.mxu1 %v2072_v60  ;;  %v2040_v27 = vor.u32 %v2773_v16, %v2037_v17  ;;  %v2764_v46 = vld [vmem:[%s4459_s1 + $0xb4] sm:$0xf0]  ;;  %v2123_v47 = vld [vmem:[%s4459_s1 + $0x1a8] sm:$0xf]  ;;  %v2380_v50 = vor.u32 %v2860_v41, %v2379_v40 }
  0x3c   :  { %886 = vmatpush.bf16.msrb.mxu0 %v1928_v8  ;;  %v2796_v49 = vld [vmem:[%s4459_s1 + $0x1b4] sm:$0xf0]  ;;  %v2235_v51 = vld [vmem:[%s4459_s1 + $0x288] sm:$0xf]  ;;  %v1996_v58 = vor.u32 %v2764_v46, %v1995_v44 }
  0x3d   :  { %v2824_v52 = vld [vmem:[%s4459_s1 + $0x294] sm:$0xf0]  ;;  %v2363_v55 = vld [vmem:[%s4459_s1 + $0x388] sm:$0xf]  ;;  %v2124_v59 = vor.u32 %v2796_v49, %v2123_v47 }
  0x3e   :  { %914 = vmatpush.bf16.msrb.mxu2 %v2184_v61  ;;  %v2856_v56 = vld [vmem:[%s4459_s1 + $0x394] sm:$0xf0]  ;;  %v1979_v60 = vld [vmem:[%s4459_s1 + $0x88] sm:$0xf]  ;;  %v2236_v61 = vor.u32 %v2824_v52, %v2235_v51 }
  0x3f   :  { %928 = vmatpush.bf16.msrb.mxu3 %v2312_v1  ;;  %900 = vmatpush.bf16.msrb.mxu1 %v2056_v11  ;;  %v2760_v62 = vld [vmem:[%s4459_s1 + $0x94] sm:$0xf0]  ;;  %v2107_v63 = vld [vmem:[%s4459_s1 + $0x188] sm:$0xf]  ;;  %v2364_v1 = vor.u32 %v2856_v56, %v2363_v55 }
  0x40   :  { %887 = vmatpush.bf16.msrb.mxu0 %v1912_v24  ;;  %v2792_v0 = vld [vmem:[%s4459_s1 + $0x194] sm:$0xf0]  ;;  %v2219_v2 = vld [vmem:[%s4459_s1 + $0x268] sm:$0xf]  ;;  %v1980_v6 = vor.u32 %v2760_v62, %v1979_v60 }
  0x41   :  { %v2820_v3 = vld [vmem:[%s4459_s1 + $0x274] sm:$0xf0]  ;;  %v2347_v4 = vld [vmem:[%s4459_s1 + $0x368] sm:$0xf]  ;;  %v2108_v7 = vor.u32 %v2792_v0, %v2107_v63 }
  0x42   :  { %915 = vmatpush.bf16.msrb.mxu2 %v2168_v12  ;;  %v2852_v5 = vld [vmem:[%s4459_s1 + $0x374] sm:$0xf0]  ;;  %v1963_v8 = vld [vmem:[%s4459_s1 + $0x68] sm:$0xf]  ;;  %v2220_v9 = vor.u32 %v2820_v3, %v2219_v2 }
  0x43   :  { %929 = vmatpush.bf16.msrb.mxu3 %v2296_v15  ;;  %901 = vmatpush.bf16.msrb.mxu1 %v2040_v27  ;;  %v2756_v10 = vld [vmem:[%s4459_s1 + $0x74] sm:$0xf0]  ;;  %v2091_v11 = vld [vmem:[%s4459_s1 + $0x168] sm:$0xf]  ;;  %v2348_v13 = vor.u32 %v2852_v5, %v2347_v4 }
  0x44   :  { %936 = vmatpush.bf16.msra.mxu0 %v2028_v30  ;;  %v2788_v12 = vld [vmem:[%s4459_s1 + $0x174] sm:$0xf0]  ;;  %v2203_v14 = vld [vmem:[%s4459_s1 + $0x248] sm:$0xf] }
  0x45   :  { %916 = vmatmul.bf16.vlgmr.msrb.gmra.mxu2 %v3346_v54  ;;  %888 = vmatmul.bf16.vlgmr.msrb.gmra.mxu0 %v3333_v48  ;;  %v2816_v15 = vld [vmem:[%s4459_s1 + $0x254] sm:$0xf0]  ;;  %v2331_v16 = vld [vmem:[%s4459_s1 + $0x348] sm:$0xf]  ;;  %v2092_v19 = vor.u32 %v2788_v12, %v2091_v11 }
  0x46   :  { %964 = vmatpush.bf16.msra.mxu2 %v2284_v18  ;;  %930 = vmatmul.bf16.vlgmr.msrb.gmra.mxu3 %v3354_v57  ;;  %v2848_v17 = vld [vmem:[%s4459_s1 + $0x354] sm:$0xf0]  ;;  %v1964_v18 = vor.u32 %v2756_v10, %v1963_v8  ;;  %v1947_v20 = vld [vmem:[%s4459_s1 + $0x48] sm:$0xf] }
  0x47   :  { %978 = vmatpush.bf16.msra.mxu3 %v2412_v21  ;;  %950 = vmatpush.bf16.msra.mxu1 %v2156_v31  ;;  %v2204_v21 = vor.u32 %v2816_v15, %v2203_v14  ;;  %v2752_v22 = vld [vmem:[%s4459_s1 + $0x54] sm:$0xf0]  ;;  %v2075_v23 = vld [vmem:[%s4459_s1 + $0x148] sm:$0xf]  ;;  %v2332_v25 = vor.u32 %v2848_v17, %v2331_v16 }
  0x48   :  { %902 = vmatmul.bf16.vlgmr.msrb.gmra.mxu1 %v3344_v53  ;;  %937 = vmatpush.bf16.msra.mxu0 %v2012_v42  ;;  %v2784_v24 = vld [vmem:[%s4459_s1 + $0x154] sm:$0xf0]  ;;  %v2187_v26 = vld [vmem:[%s4459_s1 + $0x228] sm:$0xf]  ;;  %v1948_v32 = vor.u32 %v2752_v22, %v1947_v20 }
  0x49   :  { %v2812_v27 = vld [vmem:[%s4459_s1 + $0x234] sm:$0xf0]  ;;  %v1931_v28 = vld [vmem:[%s4459_s1 + $0x28] sm:$0xf] }
  0x4a   :  { %965 = vmatpush.bf16.msra.mxu2 %v2268_v33  ;;  %v2748_v29 = vld [vmem:[%s4459_s1 + $0x34] sm:$0xf0]  ;;  %v2315_v30 = vld [vmem:[%s4459_s1 + $0x328] sm:$0xf]  ;;  %v2076_v33 = vor.u32 %v2784_v24, %v2075_v23 }
  0x4b   :  { %979 = vmatpush.bf16.msra.mxu3 %v2396_v37  ;;  %951 = vmatpush.bf16.msra.mxu1 %v2140_v43  ;;  %v2844_v31 = vld [vmem:[%s4459_s1 + $0x334] sm:$0xf0] }
  0x4c   :  { %938 = vmatpush.bf16.msra.mxu0 %v1996_v58 }
  0x4e   :  { %966 = vmatpush.bf16.msra.mxu2 %v2252_v45 }
  0x4f   :  { %980 = vmatpush.bf16.msra.mxu3 %v2380_v50  ;;  %952 = vmatpush.bf16.msra.mxu1 %v2124_v59 }
  0x50   :  { %939 = vmatpush.bf16.msra.mxu0 %v1980_v6 }
  0x52   :  { %967 = vmatpush.bf16.msra.mxu2 %v2236_v61 }
  0x53   :  { %981 = vmatpush.bf16.msra.mxu3 %v2364_v1  ;;  %953 = vmatpush.bf16.msra.mxu1 %v2108_v7 }
  0x54   :  { %940 = vmatpush.bf16.msra.mxu0 %v1964_v18 }
  0x56   :  { %968 = vmatpush.bf16.msra.mxu2 %v2220_v9 }
  0x57   :  { %982 = vmatpush.bf16.msra.mxu3 %v2348_v13  ;;  %954 = vmatpush.bf16.msra.mxu1 %v2092_v19 }
  0x58   :  { %14 = vsyncpa [#allocation3], 0  ;;  %v2188_v34 = vor.u32 %v2812_v27, %v2187_v26  ;;  %v2059_v35 = vld [vmem:[%s4459_s1 + $0x128] sm:$0xf]  ;;  %v2780_v36 = vld [vmem:[%s4459_s1 + $0x134] sm:$0xf0]  ;;  %v2316_v38 = vor.u32 %v2844_v31, %v2315_v30  ;;  %941 = vmatpush.bf16.msra.mxu0 %v1948_v32  ;;  %v1932_v45 = vor.u32 %v2748_v29, %v1931_v28 }
  0x59   :  { %v2171_v37 = vld [vmem:[%s4459_s1 + $0x208] sm:$0xf]  ;;  %v2808_v39 = vld [vmem:[%s4459_s1 + $0x214] sm:$0xf0]  ;;  %v2834_v40 = vld [vmem:[%s4459_s1 + $0x2ec] sm:$0xf]  ;;  %v2060_v46 = vor.u32 %v2780_v36, %v2059_v35 }
  0x5a   :  { %969 = vmatpush.bf16.msra.mxu2 %v2204_v21  ;;  %v2285_v41 = vld [vmem:[%s4459_s1 + $0x2f8] sm:$0xf0]  ;;  %v1915_v42 = vld [vmem:[%s4459_s1 + $0x8] sm:$0xf]  ;;  %v2840_v44 = vld [vmem:[%s4459_s1 + $0x314] sm:$0xf0]  ;;  %v2172_v51 = vor.u32 %v2808_v39, %v2171_v37 }
  0x5b   :  { %983 = vmatpush.bf16.msra.mxu3 %v2332_v25  ;;  %v2299_v43 = vld [vmem:[%s4459_s1 + $0x308] sm:$0xf]  ;;  %955 = vmatpush.bf16.msra.mxu1 %v2076_v33  ;;  %v2744_v47 = vld [vmem:[%s4459_s1 + $0x14] sm:$0xf0]  ;;  %v2866_v49 = vld [vmem:[%s4459_s1 + $0x3ec] sm:$0xf]  ;;  %v2288_v58 = vor.u32 %v2834_v40, %v2285_v41 }
  0x5c   :  { %v2413_v50 = vld [vmem:[%s4459_s1 + $0x3f8] sm:$0xf0]  ;;  %v2770_v52 = vld [vmem:[%s4459_s1 + $0xec] sm:$0xf]  ;;  %v2043_v55 = vld [vmem:[%s4459_s1 + $0x108] sm:$0xf]  ;;  %v2300_v59 = vor.u32 %v2840_v44, %v2299_v43  ;;  %942 = vmatpush.bf16.msra.mxu0 %v1932_v45  ;;  %v1916_v2 = vor.u32 %v2744_v47, %v1915_v42 }
  0x5d   :  { %v2776_v56 = vld [vmem:[%s4459_s1 + $0x114] sm:$0xf0]  ;;  %v2029_v60 = vld [vmem:[%s4459_s1 + $0xf8] sm:$0xf0]  ;;  %v2802_v61 = vld [vmem:[%s4459_s1 + $0x1ec] sm:$0xf]  ;;  %v2416_v63 = vor.u32 %v2866_v49, %v2413_v50 }
  0x5e   :  { %970 = vmatpush.bf16.msra.mxu2 %v2188_v34  ;;  %v2157_v62 = vld [vmem:[%s4459_s1 + $0x1f8] sm:$0xf0]  ;;  %v2830_v0 = vld [vmem:[%s4459_s1 + $0x2cc] sm:$0xf]  ;;  %v2044_v3 = vor.u32 %v2776_v56, %v2043_v55  ;;  %v2032_v6 = vor.u32 %v2770_v52, %v2029_v60  ;;  %vm1502_vm0 = vcmask 1043456   ;;  %vm1056_vm1 = vcmask 1048512  }
  0x5f   :  { %984 = vmatpush.bf16.msra.mxu3 %v2316_v38  ;;  %v2269_v1 = vld [vmem:[%s4459_s1 + $0x2d8] sm:$0xf0]  ;;  %956 = vmatpush.bf16.msra.mxu1 %v2060_v46  ;;  %v2862_v4 = vld [vmem:[%s4459_s1 + $0x3cc] sm:$0xf]  ;;  %v2160_v7 = vor.u32 %v2802_v61, %v2157_v62  ;;  %vm1087_vm2 = vcmask 1039360   ;;  %vm1498_vm3 = vcmask 982016  }
  0x60   :  { %v2397_v5 = vld [vmem:[%s4459_s1 + $0x3d8] sm:$0xf0]  ;;  %v2766_v8 = vld [vmem:[%s4459_s1 + $0xcc] sm:$0xf]  ;;  %v2272_v9 = vor.u32 %v2830_v0, %v2269_v1  ;;  %943 = vmatpush.bf16.msra.mxu0 %v1916_v2  ;;  %vm1625_vm4 = vcmask 1048448   ;;  %vm1780_vm5 = vcmask 916480  }
  0x61   :  { %v2013_v10 = vld [vmem:[%s4459_s1 + $0xd8] sm:$0xf0]  ;;  %v2798_v11 = vld [vmem:[%s4459_s1 + $0x1cc] sm:$0xf]  ;;  %v2400_v13 = vor.u32 %v2862_v4, %v2397_v5  ;;  %s3042_s21 = smov 48   ;;  %vm1814_vm6 = vcmask 1047936  }
  0x62   :  { %971 = vmatpush.bf16.msra.mxu2 %v2172_v51  ;;  %v2141_v12 = vld [vmem:[%s4459_s1 + $0x1d8] sm:$0xf0]  ;;  %v2826_v14 = vld [vmem:[%s4459_s1 + $0x2ac] sm:$0xf]  ;;  %v2016_v18 = vor.u32 %v2766_v8, %v2013_v10  ;;  %vm1866_vm7 = vcmask 392192   ;;  %vm1884_vm8 = vcmask 261120  }
  0x63   :  { %985 = vmatpush.bf16.msra.mxu3 %v2300_v59  ;;  %v2253_v15 = vld [vmem:[%s4459_s1 + $0x2b8] sm:$0xf0]  ;;  %957 = vmatpush.bf16.msra.mxu1 %v2044_v3  ;;  %v2858_v16 = vld [vmem:[%s4459_s1 + $0x3ac] sm:$0xf]  ;;  %v2144_v19 = vor.u32 %v2798_v11, %v2141_v12  ;;  %s1893_s10 = sshll.u32 %s4467_s9, 4  ;;  %s3044_s11 = smov 128   ;;  %s1894_s10 = int_to_ptr.hbm [resolvable:$true] %s1893_s10 }
  0x64   :  { %v2381_v17 = vld [vmem:[%s4459_s1 + $0x3b8] sm:$0xf0]  ;;  %992 = vmatpush.bf16.msrb.mxu0 %v2032_v6  ;;  %v2762_v20 = vld [vmem:[%s4459_s1 + $0xac] sm:$0xf]  ;;  %v2256_v21 = vor.u32 %v2826_v14, %v2253_v15  ;;  %s3045_s12 = smov 8  }
  0x65   :  { %v1997_v22 = vld [vmem:[%s4459_s1 + $0xb8] sm:$0xf0]  ;;  %v2794_v23 = vld [vmem:[%s4459_s1 + $0x1ac] sm:$0xf]  ;;  %v2384_v25 = vor.u32 %v2858_v16, %v2381_v17  ;;  %972 = vmatmul.bf16.vlgmr.msra.gmra.mxu2 %v3346_v54  ;;  %944 = vmatmul.bf16.vlgmr.msra.gmra.mxu0 %v3333_v48 }
  0x66   :  { %1020 = vmatpush.bf16.msrb.mxu2 %v2288_v58  ;;  %v2125_v24 = vld [vmem:[%s4459_s1 + $0x1b8] sm:$0xf0]  ;;  %986 = vmatmul.bf16.vlgmr.msra.gmra.mxu3 %v3354_v57  ;;  %v2822_v26 = vld [vmem:[%s4459_s1 + $0x28c] sm:$0xf]  ;;  %v2000_v30 = vor.u32 %v2762_v20, %v1997_v22 }
  0x67   :  { %1034 = vmatpush.bf16.msrb.mxu3 %v2416_v63  ;;  %1006 = vmatpush.bf16.msrb.mxu1 %v2160_v7  ;;  %v2237_v27 = vld [vmem:[%s4459_s1 + $0x298] sm:$0xf0]  ;;  %v2854_v28 = vld [vmem:[%s4459_s1 + $0x38c] sm:$0xf]  ;;  %v2128_v31 = vor.u32 %v2794_v23, %v2125_v24 }
  0x68   :  { %v2365_v29 = vld [vmem:[%s4459_s1 + $0x398] sm:$0xf0]  ;;  %958 = vmatmul.bf16.vlgmr.msra.gmra.mxu1 %v3344_v53  ;;  %993 = vmatpush.bf16.msrb.mxu0 %v2016_v18  ;;  %v2758_v32 = vld [vmem:[%s4459_s1 + $0x8c] sm:$0xf]  ;;  %v2240_v33 = vor.u32 %v2822_v26, %v2237_v27 }
  0x69   :  { %v1981_v34 = vld [vmem:[%s4459_s1 + $0x98] sm:$0xf0]  ;;  %v2790_v35 = vld [vmem:[%s4459_s1 + $0x18c] sm:$0xf]  ;;  %v2368_v37 = vor.u32 %v2854_v28, %v2365_v29  ;;  %v3915_v28 = vld [vmem:[%s4460_s2] sm:$0xf] }
  0x6a   :  { %1021 = vmatpush.bf16.msrb.mxu2 %v2272_v9  ;;  %v2109_v36 = vld [vmem:[%s4459_s1 + $0x198] sm:$0xf0]  ;;  %v2818_v38 = vld [vmem:[%s4459_s1 + $0x26c] sm:$0xf]  ;;  %v1984_v42 = vor.u32 %v2758_v32, %v1981_v34  ;;  %v176_v29 = vperm.slane %v3915_v28, 0  ;;  %s3040_s2 = smov 127  }
  0x6b   :  { %1035 = vmatpush.bf16.msrb.mxu3 %v2400_v13  ;;  %1007 = vmatpush.bf16.msrb.mxu1 %v2144_v19  ;;  %v2221_v39 = vld [vmem:[%s4459_s1 + $0x278] sm:$0xf0]  ;;  %v2850_v40 = vld [vmem:[%s4459_s1 + $0x36c] sm:$0xf]  ;;  %v2112_v43 = vor.u32 %v2790_v35, %v2109_v36 }
  0x6c   :  { %v2349_v41 = vld [vmem:[%s4459_s1 + $0x378] sm:$0xf0]  ;;  %994 = vmatpush.bf16.msrb.mxu0 %v2000_v30  ;;  %v2754_v44 = vld [vmem:[%s4459_s1 + $0x6c] sm:$0xf]  ;;  %v2224_v45 = vor.u32 %v2818_v38, %v2221_v39 }
  0x6d   :  { %v1965_v46 = vld [vmem:[%s4459_s1 + $0x78] sm:$0xf0]  ;;  %v2786_v47 = vld [vmem:[%s4459_s1 + $0x16c] sm:$0xf]  ;;  %v2352_v50 = vor.u32 %v2850_v40, %v2349_v41 }
  0x6e   :  { %1022 = vmatpush.bf16.msrb.mxu2 %v2256_v21  ;;  %v2093_v49 = vld [vmem:[%s4459_s1 + $0x178] sm:$0xf0]  ;;  %v2814_v51 = vld [vmem:[%s4459_s1 + $0x24c] sm:$0xf]  ;;  %v1968_v58 = vor.u32 %v2754_v44, %v1965_v46 }
  0x6f   :  { %1036 = vmatpush.bf16.msrb.mxu3 %v2384_v25  ;;  %1008 = vmatpush.bf16.msrb.mxu1 %v2128_v31  ;;  %v2205_v52 = vld [vmem:[%s4459_s1 + $0x258] sm:$0xf0]  ;;  %v2846_v55 = vld [vmem:[%s4459_s1 + $0x34c] sm:$0xf]  ;;  %v2096_v59 = vor.u32 %v2786_v47, %v2093_v49 }
  0x70   :  { %v2333_v56 = vld [vmem:[%s4459_s1 + $0x358] sm:$0xf0]  ;;  %995 = vmatpush.bf16.msrb.mxu0 %v1984_v42  ;;  %v2750_v60 = vld [vmem:[%s4459_s1 + $0x4c] sm:$0xf]  ;;  %v2208_v61 = vor.u32 %v2814_v51, %v2205_v52 }
  0x71   :  { %v1949_v62 = vld [vmem:[%s4459_s1 + $0x58] sm:$0xf0]  ;;  %v2782_v63 = vld [vmem:[%s4459_s1 + $0x14c] sm:$0xf]  ;;  %v2336_v1 = vor.u32 %v2846_v55, %v2333_v56 }
  0x72   :  { %1023 = vmatpush.bf16.msrb.mxu2 %v2240_v33  ;;  %v2077_v0 = vld [vmem:[%s4459_s1 + $0x158] sm:$0xf0]  ;;  %v2810_v2 = vld [vmem:[%s4459_s1 + $0x22c] sm:$0xf]  ;;  %v1952_v6 = vor.u32 %v2750_v60, %v1949_v62 }
  0x73   :  { %1037 = vmatpush.bf16.msrb.mxu3 %v2368_v37  ;;  %1009 = vmatpush.bf16.msrb.mxu1 %v2112_v43  ;;  %v2189_v3 = vld [vmem:[%s4459_s1 + $0x238] sm:$0xf0]  ;;  %v2842_v4 = vld [vmem:[%s4459_s1 + $0x32c] sm:$0xf]  ;;  %v2080_v7 = vor.u32 %v2782_v63, %v2077_v0 }
  0x74   :  { %v2317_v5 = vld [vmem:[%s4459_s1 + $0x338] sm:$0xf0]  ;;  %996 = vmatpush.bf16.msrb.mxu0 %v1968_v58  ;;  %v2746_v8 = vld [vmem:[%s4459_s1 + $0x2c] sm:$0xf]  ;;  %v2192_v9 = vor.u32 %v2810_v2, %v2189_v3 }
  0x75   :  { %v1933_v10 = vld [vmem:[%s4459_s1 + $0x38] sm:$0xf0]  ;;  %v2778_v11 = vld [vmem:[%s4459_s1 + $0x12c] sm:$0xf]  ;;  %v2320_v13 = vor.u32 %v2842_v4, %v2317_v5 }
  0x76   :  { %1024 = vmatpush.bf16.msrb.mxu2 %v2224_v45  ;;  %v2061_v12 = vld [vmem:[%s4459_s1 + $0x138] sm:$0xf0]  ;;  %v2806_v14 = vld [vmem:[%s4459_s1 + $0x20c] sm:$0xf]  ;;  %v1936_v18 = vor.u32 %v2746_v8, %v1933_v10  ;;  %v177_v45 = vperm.slane %v3915_v28, 1 }
  0x77   :  { %1038 = vmatpush.bf16.msrb.mxu3 %v2352_v50  ;;  %1010 = vmatpush.bf16.msrb.mxu1 %v2096_v59  ;;  %v2173_v15 = vld [vmem:[%s4459_s1 + $0x218] sm:$0xf0]  ;;  %v2838_v16 = vld [vmem:[%s4459_s1 + $0x30c] sm:$0xf]  ;;  %v2064_v19 = vor.u32 %v2778_v11, %v2061_v12 }
  0x78   :  { %v2301_v17 = vld [vmem:[%s4459_s1 + $0x318] sm:$0xf0]  ;;  %997 = vmatpush.bf16.msrb.mxu0 %v1952_v6  ;;  %v2176_v20 = vor.u32 %v2806_v14, %v2173_v15  ;;  %v2742_v21 = vld [vmem:[%s4459_s1 + $0xc] sm:$0xf]  ;;  %v178_v14 = vperm.slane %v3915_v28, 2  ;;  %v179_v15 = vperm.slane %v3915_v28, 3 }
  0x79   :  { %v1917_v22 = vld [vmem:[%s4459_s1 + $0x18] sm:$0xf0]  ;;  %v2304_v23 = vor.u32 %v2838_v16, %v2301_v17  ;;  %v2774_v24 = vld [vmem:[%s4459_s1 + $0x10c] sm:$0xf] }
  0x7a   :  { %1025 = vmatpush.bf16.msrb.mxu2 %v2208_v61  ;;  %v2045_v25 = vld [vmem:[%s4459_s1 + $0x118] sm:$0xf0]  ;;  %v1920_v26 = vor.u32 %v2742_v21, %v1917_v22  ;;  %s3039_s1 = smov 120   ;;  %v2603_v21 = vld [vmem:[%s4461_s3 + $0x170] sm:$0xf] }
  0x7b   :  { %1039 = vmatpush.bf16.msrb.mxu3 %v2336_v1  ;;  %1011 = vmatpush.bf16.msrb.mxu1 %v2080_v7  ;;  %v2048_v27 = vor.u32 %v2774_v24, %v2045_v25  ;;  %v2916_v22 = vld [vmem:[%s4461_s3 + $0x174] sm:$0xf0] }
  0x7c   :  { %998 = vmatpush.bf16.msrb.mxu0 %v1936_v18 }
  0x7e   :  { %1026 = vmatpush.bf16.msrb.mxu2 %v2192_v9 }
  0x7f   :  { %1040 = vmatpush.bf16.msrb.mxu3 %v2320_v13  ;;  %1012 = vmatpush.bf16.msrb.mxu1 %v2064_v19 }
  0x80   :  { %999 = vmatpush.bf16.msrb.mxu0 %v1920_v26  ;;  %v2604_v26 = vor.u32 %v2916_v22, %v2603_v21  ;;  %v2451_v21 = vld [vmem:[%s4461_s3 + $0x40] sm:$0xf]  ;;  %v2878_v22 = vld [vmem:[%s4461_s3 + $0x44] sm:$0xf0] }
  0x82   :  { %1027 = vmatpush.bf16.msrb.mxu2 %v2176_v20  ;;  %v3943_v20 = vld [vmem:[%s4461_s3 + $0x1f0] sm:$0xff] }
  0x83   :  { %1041 = vmatpush.bf16.msrb.mxu3 %v2304_v23  ;;  %1013 = vmatpush.bf16.msrb.mxu1 %v2048_v27  ;;  %v1370_v25 = vunpack.c.l.b16 %v3943_v20  ;;  %v2595_v27 = vld [vmem:[%s4461_s3 + $0x160] sm:$0xf] }
  0x84   :  { %1000 = vmatmul.bf16.vlgmr.msrb.gmra.mxu0 %v3333_v48 }
  0x85   :  { %1028 = vmatmul.bf16.vlgmr.msrb.gmra.mxu2 %v3346_v54 }
  0x86   :  { %1042 = vmatmul.bf16.vlgmr.msrb.gmra.mxu3 %v3354_v57  ;;  %1014 = vmatmul.bf16.vlgmr.msrb.gmra.mxu1 %v3344_v53 }
  0x87   :  { %1537 = vmatpush.bf16.msra.mxu2 %v2604_v26  ;;  %v2894_v26 = vld [vmem:[%s4461_s3 + $0xc4] sm:$0xf0] }
  0xa1   :  { %v847_v31 = vpop.f32.mrf.mxu1 }
  0xa2   :  { %v833_v30 = vpop.f32.mrf.mxu0 }
  0xa3   :  { %v834_v32 = vadd.f32 %v833_v30, %v176_v29  ;;  %v2930_v30 = vld [vmem:[%s4461_s3 + $0x1e4] sm:$0xf0] }
  0xa5   :  { %v848_v34 = vadd.f32 %v847_v31, %v834_v32  ;;  %v2914_v31 = vld [vmem:[%s4461_s3 + $0x164] sm:$0xf0] }
  0xa8   :  { %v861_v33 = vpop.f32.mrf.mxu2 }
  0xa9   :  { %v875_v54 = vpop.f32.mrf.mxu3  ;;  %v862_v57 = vadd.f32 %v861_v33, %v848_v34  ;;  %v849_v37 = vpop.f32.mrf.mxu1  ;;  %v1434_v33 = vpack.c.b16 %v1370_v25, %v1370_v25  ;;  %v2596_v34 = vor.u32 %v2914_v31, %v2595_v27  ;;  %v2515_v25 = vld [vmem:[%s4461_s3 + $0xc0] sm:$0xf] }
  0xaa   :  { %v835_v35 = vpop.f32.mrf.mxu0 }
  0xab   :  { %v836_v36 = vadd.f32 %v835_v35, %v176_v29  ;;  %v876_v53 = vadd.f32 %v875_v54, %v862_v57  ;;  %v2659_v29 = vld [vmem:[%s4461_s3 + $0x1e0] sm:$0xf]  ;;  %v2475_v54 = vld [vmem:[%s4461_s3 + $0x70] sm:$0xf]  ;;  %v2884_v35 = vld [vmem:[%s4461_s3 + $0x74] sm:$0xf0]  ;;  %1538 = vmatpush.bf16.msra.mxu2 %v2596_v34  ;;  %v2516_v34 = vor.u32 %v2894_v26, %v2515_v25 }
  0xac   :  { %v2918_v26 = vld [vmem:[%s4461_s3 + $0x184] sm:$0xf0] }
  0xad   :  { %v850_v48 = vadd.f32 %v849_v37, %v836_v36  ;;  %v3918_v42 = vmax.f32 %v876_v53, 0.0  ;;  %v2539_v36 = vld [vmem:[%s4461_s3 + $0xf0] sm:$0xf]  ;;  %v2476_v37 = vor.u32 %v2884_v35, %v2475_v54  ;;  %v2912_v53 = vld [vmem:[%s4461_s3 + $0x154] sm:$0xf0] }
  0xae   :  { %v2443_v54 = vld [vmem:[%s4461_s3 + $0x30] sm:$0xf]  ;;  %v2876_v35 = vld [vmem:[%s4461_s3 + $0x34] sm:$0xf0] }
  0xaf   :  { %1509 = vmatpush.bf16.msra.mxu0 %v2476_v37  ;;  %v2892_v37 = vld [vmem:[%s4461_s3 + $0xb4] sm:$0xf0] }
  0xb0   :  { %v863_v38 = vpop.f32.mrf.mxu2 }
  0xb1   :  { %v864_v39 = vadd.f32 %v863_v38, %v850_v48  ;;  %v877_v40 = vpop.f32.mrf.mxu3  ;;  %v2900_v48 = vld [vmem:[%s4461_s3 + $0xf4] sm:$0xf0]  ;;  %v2587_v38 = vld [vmem:[%s4461_s3 + $0x150] sm:$0xf] }
  0xb3   :  { %v878_v41 = vadd.f32 %v877_v40, %v864_v39 }
  0xb5   :  { %v3920_v43 = vmax.f32 %v878_v41, 0.0  ;;  %v1504_v41 = vsel %vm1502_vm0, %v1434_v33, 0  ;;  %v2924_v33 = vld [vmem:[%s4461_s3 + $0x1b4] sm:$0xf0] }
  0xb6   :  { %1551 = vmatpush.bf16.msra.mxu3 %v1504_v41 }
  0xb7   :  { %v2956_v44 = vpack.i.bf16 %v3920_v43, %v3918_v42 }
  0xb9   :  { %2957 = vrot.lane.b32.xlu0 %v2956_v44, %s3039_s1  ;;  %v2540_v44 = vor.u32 %v2900_v48, %v2539_v36  ;;  %v2906_v36 = vld [vmem:[%s4461_s3 + $0x124] sm:$0xf0] }
  0xbb   :  { %1523 = vmatpush.bf16.msra.mxu1 %v2540_v44  ;;  %v2627_v44 = vld [vmem:[%s4461_s3 + $0x1a0] sm:$0xf] }
  0xc2   :  { %v889_v46 = vpop.f32.mrf.mxu0 }
  0xc3   :  { %v890_v47 = vadd.f32 %v889_v46, %v177_v45  ;;  %v2660_v46 = vor.u32 %v2930_v30, %v2659_v29 }
  0xc5   :  { %v903_v49 = vpop.f32.mrf.mxu1  ;;  %1552 = vmatpush.bf16.msra.mxu3 %v2660_v46  ;;  %v2444_v46 = vor.u32 %v2876_v35, %v2443_v54  ;;  %v2886_v54 = vld [vmem:[%s4461_s3 + $0x84] sm:$0xf0]  ;;  %v2913_v35 = vld [vmem:[%s4461_s3 + $0x164] sm:$0xf] }
  0xc6   :  { %v904_v50 = vadd.f32 %v903_v49, %v890_v47  ;;  %v2467_v47 = vld [vmem:[%s4461_s3 + $0x60] sm:$0xf]  ;;  %v2882_v49 = vld [vmem:[%s4461_s3 + $0x64] sm:$0xf0] }
  0xc8   :  { %v917_v51 = vpop.f32.mrf.mxu2 }
  0xc9   :  { %v931_v52 = vpop.f32.mrf.mxu3  ;;  %v918_v55 = vadd.f32 %v917_v51, %v904_v50  ;;  %v2531_v50 = vld [vmem:[%s4461_s3 + $0xe0] sm:$0xf] }
  0xca   :  { %v891_v58 = vpop.f32.mrf.mxu0 }
  0xcb   :  { %v3925_v56 = vadd.f32 %v931_v52, %v918_v55  ;;  %v892_v59 = vadd.f32 %v891_v58, %v177_v45  ;;  %v2651_v52 = vld [vmem:[%s4461_s3 + $0x1d0] sm:$0xf]  ;;  %v2928_v55 = vld [vmem:[%s4461_s3 + $0x1d4] sm:$0xf0]  ;;  %v2588_v58 = vor.u32 %v2912_v53, %v2587_v38 }
  0xcd   :  { %v905_v60 = vpop.f32.mrf.mxu1  ;;  %1539 = vmatpush.bf16.msra.mxu2 %v2588_v58  ;;  %v2874_v58 = vld [vmem:[%s4461_s3 + $0x24] sm:$0xf0] }
  0xce   :  { %v906_v61 = vadd.f32 %v905_v60, %v892_v59  ;;  %v2468_v59 = vor.u32 %v2882_v49, %v2467_v47  ;;  %v2898_v60 = vld [vmem:[%s4461_s3 + $0xe4] sm:$0xf0] }
  0xd0   :  { %v919_v62 = vpop.f32.mrf.mxu2  ;;  %1510 = vmatpush.bf16.msra.mxu0 %v2468_v59  ;;  %v2904_v59 = vld [vmem:[%s4461_s3 + $0x114] sm:$0xf0] }
  0xd1   :  { %v933_v63 = vpop.f32.mrf.mxu3  ;;  %v920_v0 = vadd.f32 %v919_v62, %v906_v61  ;;  %v2532_v61 = vor.u32 %v2898_v60, %v2531_v50  ;;  %v2579_v62 = vld [vmem:[%s4461_s3 + $0x140] sm:$0xf] }
  0xd2   :  { %v2499_v60 = vld [vmem:[%s4461_s3 + $0xa0] sm:$0xf] }
  0xd3   :  { %v3927_v1 = vadd.f32 %v933_v63, %v920_v0  ;;  %v2910_v63 = vld [vmem:[%s4461_s3 + $0x144] sm:$0xf0]  ;;  %v2459_v0 = vld [vmem:[%s4461_s3 + $0x50] sm:$0xf]  ;;  %1524 = vmatpush.bf16.msra.mxu1 %v2532_v61 }
  0xd4   :  { %v2890_v61 = vld [vmem:[%s4461_s3 + $0xa4] sm:$0xf0] }
  0xd5   :  { %v1053_v2 = vmax.f32 %v3927_v1, 0.0 }
  0xd7   :  { %v2976_v3 = vpack.i.bf16 %v1053_v2, %v3920_v43 }
  0xd9   :  { %2977 = vrot.lane.b32.xlu2 %v2976_v3, %s3040_s2 }
  0xe2   :  { %v945_v4 = vpop.f32.mrf.mxu0 }
  0xe3   :  { %v946_v18 = vadd.f32 %v945_v4, %v178_v14 }
  0xe5   :  { %v959_v5 = vpop.f32.mrf.mxu1 }
  0xe6   :  { %v960_v57 = vadd.f32 %v959_v5, %v946_v18 }
  0xe8   :  { %v973_v6 = vpop.f32.mrf.mxu2 }
  0xe9   :  { %v3934_v8 = vpop.f32.mrf.mxu3  ;;  %v974_v3 = vadd.f32 %v973_v6, %v960_v57  ;;  %v2643_v6 = vld [vmem:[%s4461_s3 + $0x1c0] sm:$0xf]  ;;  %v2507_v57 = vld [vmem:[%s4461_s3 + $0xb0] sm:$0xf] }
  0xea   :  { %v947_v7 = vpop.f32.mrf.mxu0 }
  0xeb   :  { %v948_v19 = vadd.f32 %v947_v7, %v178_v14  ;;  %v2880_v7 = vld [vmem:[%s4461_s3 + $0x54] sm:$0xf0]  ;;  %v2652_v14 = vor.u32 %v2928_v55, %v2651_v52  ;;  %v4046_v27 = vadd.f32 %v3934_v8, %v974_v3  ;;  %v2452_v8 = vor.u32 %v2878_v22, %v2451_v21  ;;  %v2555_v52 = vld [vmem:[%s4461_s3 + $0x110] sm:$0xf]  ;;  %v2435_v55 = vld [vmem:[%s4461_s3 + $0x20] sm:$0xf] }
  0xec   :  { %v2605_v21 = vld [vmem:[%s4461_s3 + $0x178] sm:$0xf0]  ;;  %v1049_v22 = vmax.f32 %v3925_v56, 0.0 }
  0xed   :  { %v961_v9 = vpop.f32.mrf.mxu1  ;;  %1553 = vmatpush.bf16.msra.mxu3 %v2652_v14  ;;  %v1050_v48 = vmax.f32 %v4046_v27, 0.0  ;;  %v2500_v14 = vor.u32 %v2890_v61, %v2499_v60  ;;  %v2541_v61 = vld [vmem:[%s4461_s3 + $0xf8] sm:$0xf0] }
  0xee   :  { %v962_v39 = vadd.f32 %v961_v9, %v948_v19  ;;  %v2523_v9 = vld [vmem:[%s4461_s3 + $0xd0] sm:$0xf] }
  0xef   :  { %v2571_v19 = vld [vmem:[%s4461_s3 + $0x130] sm:$0xf] }
  0xf0   :  { %v975_v10 = vpop.f32.mrf.mxu2 }
  0xf1   :  { %v3936_v12 = vpop.f32.mrf.mxu3  ;;  %v976_v4 = vadd.f32 %v975_v10, %v962_v39  ;;  %v2926_v10 = vld [vmem:[%s4461_s3 + $0x1c4] sm:$0xf0] }
  0xf2   :  { %v2644_v31 = vor.u32 %v2926_v10, %v2643_v6  ;;  %v2902_v6 = vld [vmem:[%s4461_s3 + $0x104] sm:$0xf0]  ;;  %v2427_v10 = vld [vmem:[%s4461_s3 + $0x10] sm:$0xf] }
  0xf4   :  { %1554 = vmatpush.bf16.msra.mxu3 %v2644_v31 }
 0x101   :  { %v1001_v11 = vpop.f32.mrf.mxu0 }
 0x102   :  { %v1002_v23 = vadd.f32 %v1001_v11, %v179_v15  ;;  %v2896_v11 = vld [vmem:[%s4461_s3 + $0xd4] sm:$0xf0] }
 0x103   :  { %v1015_v13 = vpop.f32.mrf.mxu1  ;;  %v2524_v18 = vor.u32 %v2896_v11, %v2523_v9  ;;  %v2436_v9 = vor.u32 %v2874_v58, %v2435_v55  ;;  %v2547_v11 = vld [vmem:[%s4461_s3 + $0x100] sm:$0xf]  ;;  %v2883_v55 = vld [vmem:[%s4461_s3 + $0x74] sm:$0xf]  ;;  %v2477_v58 = vld [vmem:[%s4461_s3 + $0x78] sm:$0xf0] }
 0x104   :  { %v1016_v40 = vadd.f32 %v1015_v13, %v1002_v23  ;;  %v2908_v23 = vld [vmem:[%s4461_s3 + $0x134] sm:$0xf0]  ;;  %v2548_v31 = vor.u32 %v2902_v6, %v2547_v11  ;;  %v2480_v60 = vor.u32 %v2883_v55, %v2477_v58  ;;  %v2469_v11 = vld [vmem:[%s4461_s3 + $0x68] sm:$0xf0]  ;;  %v2891_v55 = vld [vmem:[%s4461_s3 + $0xb4] sm:$0xf] }
 0x105   :  { %1525 = vmatpush.bf16.msra.mxu1 %v2524_v18  ;;  %v2888_v18 = vld [vmem:[%s4461_s3 + $0x94] sm:$0xf0]  ;;  %v2533_v6 = vld [vmem:[%s4461_s3 + $0xe8] sm:$0xf0] }
 0x108   :  { %v1029_v16 = vpop.f32.mrf.mxu2 }
 0x109   :  { %v1003_v17 = vpop.f32.mrf.mxu0  ;;  %v3951_v24 = vpop.f32.mrf.mxu3  ;;  %v1030_v5 = vadd.f32 %v1029_v16, %v1016_v40  ;;  %1526 = vmatpush.bf16.msra.mxu1 %v2516_v34 }
 0x10a   :  { %v1004_v28 = vadd.f32 %v1003_v17, %v179_v15  ;;  %v2460_v15 = vor.u32 %v2880_v7, %v2459_v0  ;;  %v2580_v17 = vor.u32 %v2910_v63, %v2579_v62  ;;  %v2920_v7 = vld [vmem:[%s4461_s3 + $0x194] sm:$0xf0] }
 0x10b   :  { %v1017_v32 = vpop.f32.mrf.mxu1  ;;  %v4052_v29 = vadd.f32 %v3951_v24, %v1030_v5  ;;  %v2563_v24 = vld [vmem:[%s4461_s3 + $0x120] sm:$0xf]  ;;  %v2619_v5 = vld [vmem:[%s4461_s3 + $0x190] sm:$0xf] }
 0x10c   :  { %v1018_v45 = vadd.f32 %v1017_v32, %v1004_v28  ;;  %v4049_v28 = vadd.f32 %v3936_v12, %v976_v4  ;;  %v2635_v32 = vld [vmem:[%s4461_s3 + $0x1b0] sm:$0xf]  ;;  %1511 = vmatpush.bf16.msra.mxu0 %v2460_v15  ;;  %1540 = vmatpush.bf16.msra.mxu2 %v2580_v17  ;;  %v2572_v12 = vor.u32 %v2908_v23, %v2571_v19  ;;  %v2872_v15 = vld [vmem:[%s4461_s3 + $0x14] sm:$0xf0]  ;;  %v2915_v19 = vld [vmem:[%s4461_s3 + $0x174] sm:$0xf] }
 0x10d   :  { %v1051_v53 = vmax.f32 %v4052_v29, 0.0  ;;  %v2636_v41 = vor.u32 %v2924_v33, %v2635_v32  ;;  %v2564_v50 = vor.u32 %v2906_v36, %v2563_v24  ;;  %v2491_v17 = vld [vmem:[%s4461_s3 + $0x90] sm:$0xf]  ;;  %v2611_v23 = vld [vmem:[%s4461_s3 + $0x180] sm:$0xf]  ;;  %v2428_v25 = vor.u32 %v2872_v15, %v2427_v10 }
 0x10e   :  { %v1054_v38 = vmax.f32 %v4049_v28, 0.0  ;;  %v2492_v32 = vor.u32 %v2888_v18, %v2491_v17  ;;  %v2419_v33 = vld [vmem:[%s4461_s3] sm:$0xf]  ;;  %v2608_v34 = vor.u32 %v2915_v19, %v2605_v21  ;;  %v2597_v36 = vld [vmem:[%s4461_s3 + $0x168] sm:$0xf0] }
 0x10f   :  { %1555 = vmatpush.bf16.msra.mxu3 %v2636_v41  ;;  %v2483_v24 = vld [vmem:[%s4461_s3 + $0x80] sm:$0xf]  ;;  %v2909_v10 = vld [vmem:[%s4461_s3 + $0x144] sm:$0xf]  ;;  %v2581_v15 = vld [vmem:[%s4461_s3 + $0x148] sm:$0xf0] }
 0x110   :  { %v1031_v51 = vpop.f32.mrf.mxu2  ;;  %1512 = vmatpush.bf16.msra.mxu0 %v2452_v8  ;;  %1541 = vmatpush.bf16.msra.mxu2 %v2572_v12  ;;  %v2870_v8 = vld [vmem:[%s4461_s3 + $0x4] sm:$0xf0]  ;;  %v2484_v41 = vor.u32 %v2886_v54, %v2483_v24  ;;  %v2584_v17 = vor.u32 %v2909_v10, %v2581_v15  ;;  %v2923_v18 = vld [vmem:[%s4461_s3 + $0x1b4] sm:$0xf]  ;;  %v2637_v19 = vld [vmem:[%s4461_s3 + $0x1b8] sm:$0xf0] }
 0x111   :  { %v1032_v13 = vadd.f32 %v1031_v51, %v1018_v45  ;;  %v1045_v16 = vpop.f32.mrf.mxu3  ;;  %v2922_v45 = vld [vmem:[%s4461_s3 + $0x1a4] sm:$0xf0]  ;;  %v2508_v51 = vor.u32 %v2892_v37, %v2507_v57  ;;  %v2971_v57 = vpack.i.bf16 %v1049_v22, %v3918_v42  ;;  %v2612_v37 = vor.u32 %v2918_v26, %v2611_v23  ;;  %v2461_v23 = vld [vmem:[%s4461_s3 + $0x58] sm:$0xf0]  ;;  %v2629_v24 = vld [vmem:[%s4461_s3 + $0x1a8] sm:$0xf0] }
 0x112   :  { %v2628_v0 = vor.u32 %v2922_v45, %v2627_v44  ;;  %v2929_v45 = vld [vmem:[%s4461_s3 + $0x1e4] sm:$0xf]  ;;  %v2640_v21 = vor.u32 %v2923_v18, %v2637_v19  ;;  %v2549_v10 = vld [vmem:[%s4461_s3 + $0x108] sm:$0xf0]  ;;  %v2887_v18 = vld [vmem:[%s4461_s3 + $0x94] sm:$0xf] }
 0x113   :  { %v4054_v30 = vadd.f32 %v1045_v16, %v1032_v13  ;;  %1527 = vmatpush.bf16.msra.mxu1 %v2508_v51  ;;  %v2556_v13 = vor.u32 %v2904_v59, %v2555_v52  ;;  %v1371_v16 = vunpack.c.h.b16 %v3943_v20  ;;  %v2620_v20 = vor.u32 %v2920_v7, %v2619_v5  ;;  %v2653_v51 = vld [vmem:[%s4461_s3 + $0x1d8] sm:$0xf0]  ;;  %v2899_v59 = vld [vmem:[%s4461_s3 + $0xf4] sm:$0xf]  ;;  %v2645_v5 = vld [vmem:[%s4461_s3 + $0x1c8] sm:$0xf0] }
 0x114   :  { %1513 = vmatpush.bf16.msra.mxu0 %v2444_v46  ;;  %1542 = vmatpush.bf16.msra.mxu2 %v2564_v50  ;;  %v2661_v46 = vld [vmem:[%s4461_s3 + $0x1e8] sm:$0xf0]  ;;  %v2927_v50 = vld [vmem:[%s4461_s3 + $0x1d4] sm:$0xf] }
 0x115   :  { %v1055_v39 = vmax.f32 %v4054_v30, 0.0  ;;  %1556 = vmatpush.bf16.msra.mxu3 %v2628_v0  ;;  %v1435_v12 = vpack.c.b16 %v1371_v16, %v1371_v16  ;;  %v2656_v52 = vor.u32 %v2927_v50, %v2653_v51  ;;  %v2544_v0 = vor.u32 %v2899_v59, %v2541_v61  ;;  %v2875_v51 = vld [vmem:[%s4461_s3 + $0x34] sm:$0xf]  ;;  %v2509_v59 = vld [vmem:[%s4461_s3 + $0xb8] sm:$0xf0] }
 0x116   :  { %v2557_v61 = vld [vmem:[%s4461_s3 + $0x118] sm:$0xf0] }
 0x117   :  { %1528 = vmatpush.bf16.msra.mxu1 %v2500_v14  ;;  %v1507_v44 = vsel %vm1502_vm0, %v1435_v12, 0 }
 0x118   :  { %1514 = vmatpush.bf16.msra.mxu0 %v2436_v9  ;;  %1543 = vmatpush.bf16.msra.mxu2 %v2556_v13  ;;  %v2881_v9 = vld [vmem:[%s4461_s3 + $0x64] sm:$0xf] }
 0x119   :  { %1557 = vmatpush.bf16.msra.mxu3 %v2620_v20  ;;  %v2897_v13 = vld [vmem:[%s4461_s3 + $0xe4] sm:$0xf]  ;;  %v2472_v14 = vor.u32 %v2881_v9, %v2469_v11  ;;  %v2879_v20 = vld [vmem:[%s4461_s3 + $0x54] sm:$0xf]  ;;  %v2501_v11 = vld [vmem:[%s4461_s3 + $0xa8] sm:$0xf0] }
 0x11a   :  { %v2536_v16 = vor.u32 %v2897_v13, %v2533_v6  ;;  %v2464_v26 = vor.u32 %v2879_v20, %v2461_v23  ;;  %v2889_v9 = vld [vmem:[%s4461_s3 + $0xa4] sm:$0xf] }
 0x11b   :  { %1529 = vmatpush.bf16.msra.mxu1 %v2492_v32  ;;  %v2907_v32 = vld [vmem:[%s4461_s3 + $0x134] sm:$0xf]  ;;  %v2901_v6 = vld [vmem:[%s4461_s3 + $0x104] sm:$0xf] }
 0x11c   :  { %1515 = vmatpush.bf16.msra.mxu0 %v2428_v25  ;;  %1544 = vmatpush.bf16.msra.mxu2 %v2548_v31  ;;  %v2895_v25 = vld [vmem:[%s4461_s3 + $0xd4] sm:$0xf]  ;;  %v2525_v31 = vld [vmem:[%s4461_s3 + $0xd8] sm:$0xf0]  ;;  %v2552_v15 = vor.u32 %v2901_v6, %v2549_v10  ;;  %v2869_v23 = vld [vmem:[%s4461_s3 + $0x4] sm:$0xf] }
 0x11d   :  { %1558 = vmatpush.bf16.msra.mxu3 %v2612_v37 }
 0x11f   :  { %1530 = vmatpush.bf16.msra.mxu1 %v2484_v41  ;;  %v2905_v41 = vld [vmem:[%s4461_s3 + $0x124] sm:$0xf] }
 0x120   :  { %1593 = vmatpush.bf16.msrb.mxu2 %v2608_v34  ;;  %v2921_v34 = vld [vmem:[%s4461_s3 + $0x1a4] sm:$0xf] }
 0x121   :  { %1607 = vmatpush.bf16.msrb.mxu3 %v1507_v44  ;;  %v2632_v54 = vor.u32 %v2921_v34, %v2629_v24  ;;  %v2565_v44 = vld [vmem:[%s4461_s3 + $0x128] sm:$0xf0] }
 0x123   :  { %1579 = vmatpush.bf16.msrb.mxu1 %v2544_v0  ;;  %v2917_v0 = vld [vmem:[%s4461_s3 + $0x184] sm:$0xf] }
 0x127   :  { %1580 = vmatpush.bf16.msrb.mxu1 %v2536_v16  ;;  %v2871_v16 = vld [vmem:[%s4461_s3 + $0x14] sm:$0xf] }
 0x12b   :  { %v2958_v40 = vpop.permute.xlu0 %2957 }
 0x12c   :  { %v2960_v47 = vunpack.i.h.bf16 %v2958_v40  ;;  %v2959_v49 = vunpack.i.l.bf16 %v2958_v40  ;;  %v2420_v40 = vor.u32 %v2870_v8, %v2419_v33  ;;  %v2573_v33 = vld [vmem:[%s4461_s3 + $0x138] sm:$0xf0]  ;;  %v2528_v8 = vor.u32 %v2895_v25, %v2525_v31  ;;  %v2421_v25 = vld [vmem:[%s4461_s3 + $0x8] sm:$0xf0] }
 0x12d   :  { %v2576_v12 = vor.u32 %v2907_v32, %v2573_v33  ;;  %v2424_v31 = vor.u32 %v2869_v23, %v2421_v25  ;;  %v2485_v32 = vld [vmem:[%s4461_s3 + $0x88] sm:$0xf0]  ;;  %v2943_v23 = vld [vmem:[%s4463_s5 + $0x60] sm:$0xff] }
 0x12e   :  { %v1062_v62 = vsel %vm1056_vm1, %v2960_v47, %v1055_v39  ;;  %v1061_v63 = vsel %vm1056_vm1, %v2959_v49, %v1051_v53  ;;  %v2600_v47 = vor.u32 %v2913_v35, %v2597_v36  ;;  %1516 = vmatpush.bf16.msra.mxu0 %v2420_v40  ;;  %v2664_v49 = vor.u32 %v2929_v45, %v2661_v46  ;;  %v2877_v35 = vld [vmem:[%s4461_s3 + $0x44] sm:$0xf]  ;;  %v2453_v36 = vld [vmem:[%s4461_s3 + $0x48] sm:$0xf0] }
 0x12f   :  { %v2966_v3 = vpack.i.bf16 %v1062_v62, %v1054_v38  ;;  %v2961_v4 = vpack.i.bf16 %v1061_v63, %v1050_v48  ;;  %v2911_v62 = vld [vmem:[%s4461_s3 + $0x154] sm:$0xf]  ;;  %v2589_v63 = vld [vmem:[%s4461_s3 + $0x158] sm:$0xf0]  ;;  %1581 = vmatpush.bf16.msrb.mxu1 %v2528_v8  ;;  %v2456_v37 = vor.u32 %v2877_v35, %v2453_v36  ;;  %v2517_v40 = vld [vmem:[%s4461_s3 + $0xc8] sm:$0xf0]  ;;  %v2568_v46 = vor.u32 %v2905_v41, %v2565_v44 }
 0x130   :  { %1594 = vmatpush.bf16.msrb.mxu2 %v2600_v47  ;;  %1608 = vmatpush.bf16.msrb.mxu3 %v2664_v49  ;;  %v2919_v47 = vld [vmem:[%s4461_s3 + $0x194] sm:$0xf]  ;;  %v2621_v49 = vld [vmem:[%s4461_s3 + $0x198] sm:$0xf0] }
 0x131   :  { %2967 = vrot.lane.b32.xlu1 %v2966_v3, %s3040_s2  ;;  %2962 = vrot.lane.b32.xlu0 %v2961_v4, %s3040_s2  ;;  %v2592_v3 = vor.u32 %v2911_v62, %v2589_v63  ;;  %v2925_v4 = vld [vmem:[%s4461_s3 + $0x1c4] sm:$0xf]  ;;  %v2624_v50 = vor.u32 %v2919_v47, %v2621_v49  ;;  %v2512_v62 = vor.u32 %v2891_v55, %v2509_v59 }
 0x132   :  { %1565 = vmatpush.bf16.msrb.mxu0 %v2480_v60  ;;  %v2648_v7 = vor.u32 %v2925_v4, %v2645_v5  ;;  %v2903_v60 = vld [vmem:[%s4461_s3 + $0x114] sm:$0xf]  ;;  %v2873_v4 = vld [vmem:[%s4461_s3 + $0x24] sm:$0xf] }
 0x133   :  { %v2560_v63 = vor.u32 %v2903_v60, %v2557_v61  ;;  %v2978_v36 = vpop.permute.xlu2 %2977 }
 0x134   :  { %1609 = vmatpush.bf16.msrb.mxu3 %v2656_v52  ;;  %1595 = vmatpush.bf16.msrb.mxu2 %v2592_v3  ;;  %v2445_v52 = vld [vmem:[%s4461_s3 + $0x38] sm:$0xf0]  ;;  %v2613_v3 = vld [vmem:[%s4461_s3 + $0x188] sm:$0xf0] }
 0x135   :  { %v2448_v58 = vor.u32 %v2875_v51, %v2445_v52  ;;  %v2616_v5 = vor.u32 %v2917_v0, %v2613_v3 }
 0x136   :  { %1566 = vmatpush.bf16.msrb.mxu0 %v2472_v14  ;;  %v2504_v14 = vor.u32 %v2889_v9, %v2501_v11 }
 0x138   :  { %1610 = vmatpush.bf16.msrb.mxu3 %v2648_v7  ;;  %1596 = vmatpush.bf16.msrb.mxu2 %v2584_v17  ;;  %v2437_v7 = vld [vmem:[%s4461_s3 + $0x28] sm:$0xf0]  ;;  %v2429_v17 = vld [vmem:[%s4461_s3 + $0x18] sm:$0xf0] }
 0x139   :  { %2972 = vrot.lane.b32.xlu1 %v2971_v57, %s3040_s2  ;;  %v2893_v57 = vld [vmem:[%s4461_s3 + $0xc4] sm:$0xf]  ;;  %v2440_v13 = vor.u32 %v2873_v4, %v2437_v7  ;;  %v2432_v19 = vor.u32 %v2871_v16, %v2429_v17  ;;  %v2938_v16 = vld [vmem:[%s4463_s5 + $0x38] sm:$0xff]  ;;  %v2945_v17 = vld [vmem:[%s4463_s5 + $0x70] sm:$0xff] }
 0x13a   :  { %1567 = vmatpush.bf16.msrb.mxu0 %v2464_v26  ;;  %v2520_v45 = vor.u32 %v2893_v57, %v2517_v40  ;;  %v2885_v26 = vld [vmem:[%s4461_s3 + $0x84] sm:$0xf] }
 0x13b   :  { %v2488_v33 = vor.u32 %v2885_v26, %v2485_v32  ;;  %v2935_v32 = vld [vmem:[%s4463_s5 + $0x20] sm:$0xff] }
 0x13c   :  { %1611 = vmatpush.bf16.msrb.mxu3 %v2640_v21  ;;  %1597 = vmatpush.bf16.msrb.mxu2 %v2576_v12  ;;  %v2493_v21 = vld [vmem:[%s4461_s3 + $0x98] sm:$0xf0] }
 0x13d   :  { %1582 = vmatpush.bf16.msrb.mxu1 %v2520_v45  ;;  %v2496_v20 = vor.u32 %v2887_v18, %v2493_v21  ;;  %v2980_v45 = vunpack.i.h.bf16 %v2978_v36  ;;  %v2937_v18 = vld [vmem:[%s4463_s5 + $0x30] sm:$0xff] }
 0x13e   :  { %1568 = vmatpush.bf16.msrb.mxu0 %v2456_v37 }
 0x140   :  { %1612 = vmatpush.bf16.msrb.mxu3 %v2632_v54  ;;  %1598 = vmatpush.bf16.msrb.mxu2 %v2568_v46  ;;  %v2979_v46 = vunpack.i.l.bf16 %v2978_v36 }
 0x141   :  { %1583 = vmatpush.bf16.msrb.mxu1 %v2512_v62 }
 0x142   :  { %1569 = vmatpush.bf16.msrb.mxu0 %v2448_v58 }
 0x144   :  { %1613 = vmatpush.bf16.msrb.mxu3 %v2624_v50  ;;  %1599 = vmatpush.bf16.msrb.mxu2 %v2560_v63  ;;  %v1091_v50 = vsel %vm1087_vm2, %v2979_v46, %v2980_v45 }
 0x145   :  { %1584 = vmatpush.bf16.msrb.mxu1 %v2504_v14  ;;  %v1106_v52 = vmax.f32 %v3920_v43, %v1091_v50  ;;  %v1177_v43 = vld [vmem:[%s4462_s4] sm:$0x3]  ;;  %s3041_s4 = smov 112  }
 0x146   :  { %1570 = vmatpush.bf16.msrb.mxu0 %v2440_v13  ;;  %v1179_v1 = vperm.slane %v1177_v43, 0  ;;  %v1180_v25 = vperm.slane %v1177_v43, 1 }
 0x148   :  { %1614 = vmatpush.bf16.msrb.mxu3 %v2616_v5  ;;  %1600 = vmatpush.bf16.msrb.mxu2 %v2552_v15 }
 0x149   :  { %1585 = vmatpush.bf16.msrb.mxu1 %v2496_v20  ;;  %v2936_v20 = vld [vmem:[%s4463_s5 + $0x28] sm:$0xff] }
 0x14a   :  { %1571 = vmatpush.bf16.msrb.mxu0 %v2432_v19  ;;  %v2944_v19 = vld [vmem:[%s4463_s5 + $0x68] sm:$0xff] }
 0x14d   :  { %1586 = vmatpush.bf16.msrb.mxu1 %v2488_v33  ;;  %v2942_v33 = vld [vmem:[%s4463_s5 + $0x58] sm:$0xff] }
 0x14e   :  { %1572 = vmatpush.bf16.msrb.mxu0 %v2424_v31 }
 0x1a3   :  { %v2968_v8 = vpop.permute.xlu1 %2967  ;;  %v2963_v12 = vpop.permute.xlu0 %2962 }
 0x1a4   :  { %v2970_v34 = vunpack.i.h.bf16 %v2968_v8  ;;  %v2969_v24 = vunpack.i.l.bf16 %v2968_v8  ;;  %v2965_v54 = vunpack.i.h.bf16 %v2963_v12  ;;  %v2964_v35 = vunpack.i.l.bf16 %v2963_v12 }
 0x1a6   :  { %v1109_v57 = vmax.f32 %v1055_v39, %v2970_v34  ;;  %v1093_v37 = vsel %vm1087_vm2, %v2969_v24, %v2970_v34  ;;  %v1105_v40 = vmax.f32 %v1051_v53, %v2965_v54  ;;  %v1090_v44 = vsel %vm1087_vm2, %v2964_v35, %v2965_v54  ;;  %v2934_v54 = vld [vmem:[%s4463_s5 + $0x18] sm:$0xff] }
 0x1a7   :  { %v1108_v41 = vmax.f32 %v1054_v38, %v1093_v37  ;;  %v1104_v49 = vmax.f32 %v1050_v48, %v1090_v44  ;;  %v1092_v29 = vsel %vm1087_vm2, %v2980_v45, %v2969_v24 }
 0x1a8   :  { %v1113_v47 = vpack.c.bf16 %v1109_v57, %v1105_v40  ;;  %v1107_v27 = vmax.f32 %v1053_v2, %v1092_v29  ;;  %v2933_v40 = vld [vmem:[%s4463_s5 + $0x10] sm:$0xff] }
 0x1a9   :  { %v1112_v30 = vpack.c.bf16 %v1108_v41, %v1104_v49  ;;  %v2940_v41 = vld [vmem:[%s4463_s5 + $0x48] sm:$0xff] }
 0x1aa   :  { %2665 = vmatmul.msk.bf16.vlgmr.msra.gmra.mxu3 %vm1498_vm3, %v1113_v47 }
 0x1ab   :  { %v2973_v39 = vpop.permute.xlu1 %2972  ;;  %1545 = vmatmul.bf16.vlgmr.msra.gmra.mxu2 %v1112_v30 }
 0x1ac   :  { %v2975_v53 = vunpack.i.h.bf16 %v2973_v39  ;;  %v2974_v28 = vunpack.i.l.bf16 %v2973_v39 }
 0x1ae   :  { %v1088_v38 = vsel %vm1087_vm2, %v2974_v28, %v2975_v53  ;;  %v1089_v51 = vsel %vm1087_vm2, %v2975_v53, %v2964_v35  ;;  %v2941_v35 = vld [vmem:[%s4463_s5 + $0x50] sm:$0xff] }
 0x1af   :  { %v1102_v48 = vmax.f32 %v3918_v42, %v1088_v38  ;;  %v1103_v55 = vmax.f32 %v1049_v22, %v1089_v51 }
 0x1b1   :  { %v1110_v58 = vpack.c.bf16 %v1106_v52, %v1102_v48  ;;  %v1111_v59 = vpack.c.bf16 %v1107_v27, %v1103_v55  ;;  %v2932_v27 = vld [vmem:[%s4463_s5 + $0x8] sm:$0xff]  ;;  %v2939_v48 = vld [vmem:[%s4463_s5 + $0x40] sm:$0xff] }
 0x1b2   :  { %v2931_v55 = vld [vmem:[%s4463_s5] sm:$0xff] }
 0x1b3   :  { %1517 = vmatmul.bf16.vlgmr.msra.gmra.mxu0 %v1110_v58  ;;  %1531 = vmatmul.bf16.vlgmr.msra.gmra.mxu1 %v1111_v59 }
 0x1b4   :  { %1784 = vmatpush.bf16.msra.mxu0 %v2938_v16  ;;  %1799 = vmatpush.bf16.msra.mxu1 %v2945_v17 }
 0x1b8   :  { %1785 = vmatpush.bf16.msra.mxu0 %v2937_v18  ;;  %1800 = vmatpush.bf16.msra.mxu1 %v2944_v19 }
 0x1ba   :  { %2666 = vmatmul.msk.bf16.vlgmr.msrb.gmra.mxu3 %vm1498_vm3, %v1113_v47 }
 0x1bb   :  { %1601 = vmatmul.bf16.vlgmr.msrb.gmra.mxu2 %v1112_v30 }
 0x1bc   :  { %1786 = vmatpush.bf16.msra.mxu0 %v2936_v20  ;;  %1801 = vmatpush.bf16.msra.mxu1 %v2943_v23 }
 0x1c0   :  { %1787 = vmatpush.bf16.msra.mxu0 %v2935_v32  ;;  %1802 = vmatpush.bf16.msra.mxu1 %v2942_v33 }
 0x1c3   :  { %1573 = vmatmul.bf16.vlgmr.msrb.gmra.mxu0 %v1110_v58  ;;  %1587 = vmatmul.bf16.vlgmr.msrb.gmra.mxu1 %v1111_v59 }
 0x1c4   :  { %1788 = vmatpush.bf16.msra.mxu0 %v2934_v54  ;;  %1803 = vmatpush.bf16.msra.mxu1 %v2941_v35  ;;  %v2946_v54 = vld [vmem:[%s4465_s7] sm:$0xff] }
 0x1c8   :  { %1789 = vmatpush.bf16.msra.mxu0 %v2933_v40  ;;  %1804 = vmatpush.bf16.msra.mxu1 %v2940_v41 }
 0x1cc   :  { %1790 = vmatpush.bf16.msra.mxu0 %v2932_v27  ;;  %1805 = vmatpush.bf16.msra.mxu1 %v2939_v48 }
 0x1d0   :  { %1791 = vmatpush.bf16.msra.mxu0 %v2931_v55 }
 0x22d   :  { %v1560_v56 = vpop.f32.mrf.mxu3 }
 0x22e   :  { %v1546_v61 = vpop.f32.mrf.mxu2 }
 0x230   :  { %v1518_v2 = vpop.f32.mrf.mxu0  ;;  %v1532_v60 = vpop.f32.mrf.mxu1 }
 0x231   :  { %v1519_v42 = vadd.f32 %v1518_v2, %v1179_v1 }
 0x233   :  { %v1533_v22 = vadd.f32 %v1532_v60, %v1519_v42 }
 0x235   :  { %v1547_v63 = vadd.f32 %v1546_v61, %v1533_v22  ;;  %v1562_v11 = vpop.f32.mrf.mxu3 }
 0x236   :  { %v1548_v5 = vpop.f32.mrf.mxu2 }
 0x237   :  { %v1561_v7 = vadd.f32 %v1560_v56, %v1547_v63 }
 0x238   :  { %v1520_v62 = vpop.f32.mrf.mxu0  ;;  %v1534_v3 = vpop.f32.mrf.mxu1 }
 0x239   :  { %v1521_v0 = vadd.f32 %v1520_v62, %v1179_v1  ;;  %v4380_v14 = vmax.f32 %v1561_v7, 0.0  ;;  %v3011_v7 = vld [vmem:[%s4464_s6] ss:$0 sm:$0xff] }
 0x23b   :  { %v1535_v4 = vadd.f32 %v1534_v3, %v1521_v0 }
 0x23d   :  { %v1549_v9 = vadd.f32 %v1548_v5, %v1535_v4  ;;  %v1616_v34 = vpop.f32.mrf.mxu3 }
 0x23e   :  { %v1602_v26 = vpop.f32.mrf.mxu2 }
 0x23f   :  { %v1563_v13 = vadd.f32 %v1562_v11, %v1549_v9 }
 0x240   :  { %v1574_v15 = vpop.f32.mrf.mxu0  ;;  %v1588_v21 = vpop.f32.mrf.mxu1 }
 0x241   :  { %v4382_v6 = vmax.f32 %v1563_v13, 0.0  ;;  %v1575_v8 = vadd.f32 %v1574_v15, %v1180_v25 }
 0x243   :  { %v2981_v10 = vpack.i.bf16 %v4382_v6, %v4380_v14  ;;  %v1589_v36 = vadd.f32 %v1588_v21, %v1575_v8 }
 0x245   :  { %2982 = vrot.lane.b32.xlu2 %v2981_v10, %s3041_s4  ;;  %v1603_v44 = vadd.f32 %v1602_v26, %v1589_v36  ;;  %v1618_v46 = vpop.f32.mrf.mxu3  ;;  %v2948_v26 = vld [vmem:[%s4465_s7 + $0x10] sm:$0xff] }
 0x246   :  { %v1604_v37 = vpop.f32.mrf.mxu2  ;;  %1875 = vmatpush.bf16.msra.mxu2 %v2948_v26 }
 0x247   :  { %v1617_v47 = vadd.f32 %v1616_v34, %v1603_v44  ;;  %v3012_v44 = vld [vmem:[%s4466_s8] ss:$0 sm:$0xff] }
 0x248   :  { %v1576_v31 = vpop.f32.mrf.mxu0  ;;  %v1590_v24 = vpop.f32.mrf.mxu1 }
 0x249   :  { %v1577_v12 = vadd.f32 %v1576_v31, %v1180_v25  ;;  %v1622_v39 = vmax.f32 %v1617_v47, 0.0  ;;  %v2947_v31 = vld [vmem:[%s4465_s7 + $0x8] sm:$0xff] }
 0x24a   :  { %1876 = vmatpush.bf16.msra.mxu2 %v2947_v31 }
 0x24b   :  { %v1591_v57 = vadd.f32 %v1590_v24, %v1577_v12 }
 0x24d   :  { %v1605_v45 = vadd.f32 %v1604_v37, %v1591_v57 }
 0x24e   :  { %1877 = vmatpush.bf16.msra.mxu2 %v2946_v54 }
 0x24f   :  { %v1619_v49 = vadd.f32 %v1618_v46, %v1605_v45 }
 0x251   :  { %v1624_v50 = vmax.f32 %v1619_v49, 0.0 }
 0x29f   :  { %v2983_v30 = vpop.permute.xlu2 %2982 }
 0x2a0   :  { %v2985_v29 = vunpack.i.h.bf16 %v2983_v30  ;;  %v2984_v53 = vunpack.i.l.bf16 %v2983_v30 }
 0x2a2   :  { %v1631_v28 = vsel %vm1625_vm4, %v2985_v29, %v1624_v50  ;;  %v1630_v38 = vsel %vm1625_vm4, %v2984_v53, %v1622_v39 }
 0x2a3   :  { %v2991_v51 = vpack.i.bf16 %v1631_v28, %v4382_v6  ;;  %v2986_v52 = vpack.i.bf16 %v1630_v38, %v4380_v14 }
 0x2a5   :  { %2992 = vrot.lane.b32.xlu1 %v2991_v51, %s3040_s2  ;;  %2987 = vrot.lane.b32.xlu0 %v2986_v52, %s3040_s2 }
 0x317   :  { %v2993_v58 = vpop.permute.xlu1 %2992  ;;  %v2988_v59 = vpop.permute.xlu0 %2987 }
 0x318   :  { %v2995_v43 = vunpack.i.h.bf16 %v2993_v58  ;;  %v2994_v1 = vunpack.i.l.bf16 %v2993_v58  ;;  %v2990_v2 = vunpack.i.h.bf16 %v2988_v59  ;;  %v2989_v60 = vunpack.i.l.bf16 %v2988_v59 }
 0x31a   :  { %v1653_v42 = vmax.f32 %v1624_v50, %v2995_v43  ;;  %v1645_v61 = vsel %vm1087_vm2, %v2994_v1, %v2995_v43  ;;  %v1651_v56 = vmax.f32 %v1622_v39, %v2990_v2  ;;  %v1644_v22 = vsel %vm1087_vm2, %v2989_v60, %v2990_v2 }
 0x31b   :  { %v1652_v62 = vmax.f32 %v4382_v6, %v1645_v61  ;;  %v1650_v63 = vmax.f32 %v4380_v14, %v1644_v22 }
 0x31c   :  { %v1655_v0 = vpack.c.bf16 %v1653_v42, %v1651_v56 }
 0x31d   :  { %v1654_v3 = vpack.c.bf16 %v1652_v62, %v1650_v63 }
 0x31e   :  { %2727 = vmatmul.msk.bf16.vlgmr.msra.gmra.mxu1 %vm1780_vm5, %v1655_v0 }
 0x31f   :  { %1792 = vmatmul.bf16.vlgmr.msra.gmra.mxu0 %v1654_v3 }
 0x39b   :  { %v1807_v4 = vpop.f32.mrf.mxu1 }
 0x39c   :  { %v1793_v5 = vpop.f32.mrf.mxu0 }
 0x39d   :  { %v1794_v9 = vadd.f32 %v3011_v7, %v1793_v5 }
 0x39f   :  { %v1808_v13 = vadd.f32 %v1807_v4, %v1794_v9 }
 0x3a1   :  { %v1812_v6 = vmax.f32 %v1808_v13, 0.0 }
 0x3a3   :  { %v1809_v15 = vpop.f32.mrf.mxu1 }
 0x3a4   :  { %v1795_v11 = vpop.f32.mrf.mxu0 }
 0x3a5   :  { %v1796_v10 = vadd.f32 %v3011_v7, %v1795_v11 }
 0x3a7   :  { %v1810_v16 = vadd.f32 %v1809_v15, %v1796_v10 }
 0x3a9   :  { %v1813_v17 = vmax.f32 %v1810_v16, 0.0 }
 0x3ab   :  { %v2996_v14 = vpack.i.bf16 %v1813_v17, %v1812_v6 }
 0x3ad   :  { %2997 = vrot.lane.b32.xlu2 %v2996_v14, %s3042_s21 }
 0x407   :  { %v2998_v18 = vpop.permute.xlu2 %2997 }
 0x408   :  { %v3000_v19 = vunpack.i.h.bf16 %v2998_v18  ;;  %v2999_v21 = vunpack.i.l.bf16 %v2998_v18 }
 0x40a   :  { %v1817_v20 = vsel %vm1814_vm6, %v2999_v21, %v1812_v6  ;;  %v1820_v23 = vsel %vm1814_vm6, %v3000_v19, %v1813_v17 }
 0x40b   :  { %v3001_v25 = vpack.i.bf16 %v1820_v23, %v1817_v20 }
 0x40d   :  { %3002 = vrot.lane.b32.xlu0 %v3001_v25, %s3042_s21 }
 0x47f   :  { %v3003_v32 = vpop.permute.xlu0 %3002 }
 0x480   :  { %v3005_v33 = vunpack.i.h.bf16 %v3003_v32  ;;  %v3004_v8 = vunpack.i.l.bf16 %v3003_v32 }
 0x482   :  { %v1825_v12 = vsel %vm1814_vm6, %v3004_v8, %v1812_v6  ;;  %v1826_v34 = vsel %vm1814_vm6, %v3005_v33, %v1813_v17 }
 0x483   :  { %v3006_v24 = vpack.i.bf16 %v1826_v34, %v1825_v12 }
 0x485   :  { %3007 = vrot.lane.b32.xlu1 %v3006_v24, %s3040_s2  ;;  %s3043_s2 = smov [#allocation2]  }
 0x486   :  { %s1891_s29 = sshll.u32 %s3043_s2, 4  ;;  %s1892_s29 = int_to_ptr.vmem [resolvable:$true] %s1891_s29 }
 0x4f7   :  { %v3008_v35 = vpop.permute.xlu1 %3007 }
 0x4f8   :  { %v3010_v36 = vunpack.i.h.bf16 %v3008_v35  ;;  %v3009_v57 = vunpack.i.l.bf16 %v3008_v35 }
 0x4fa   :  { %v1836_v37 = vmax.f32 %v1813_v17, %v3010_v36  ;;  %v1835_v40 = vmax.f32 %v1812_v6, %v3009_v57 }
 0x4fc   :  { %v1837_v41 = vpack.c.bf16 %v1836_v37, %v1835_v40 }
 0x4fe   :  { %2740 = vmatmul.msk.bf16.vlgmr.msra.gmra.mxu2 %vm1866_vm7, %v1837_v41 }
 0x581   :  { %v1879_v45 = vpop.f32.mrf.mxu2 }
 0x582   :  { %v1880_v46 = vadd.f32 %v3012_v44, %v1879_v45 }
 0x584   :  { %1885 = vst.msk [vmem:[#allocation2] sm:$0xff] %vm1884_vm8, %v1880_v46 }
 0x589   :  { %v1881_v47 = vpop.f32.mrf.mxu2 }
 0x58a   :  { %v1882_v49 = vadd.f32 %v3012_v44, %v1881_v47 }
 0x58c   :  { %1886 = vst.msk [vmem:[#allocation2 + $0x8] sm:$0xff] %vm1884_vm8, %v1882_v49 }
 0x58d   :  { %1899 = dma.vmem_to_hbm [thread:$0]  %s1892_s29, 256, %s1894_s10, [#allocation3], %s3044_s11, %s3044_s11, %s3045_s12  }
 0x58e   :  { %3037 = dma.done.wait [#allocation3], 256  }
 0x58f   :  { %3038 = vsyncadd [#allocation3], 4294967040 }
 0x590   :  { %1904 = vsyncpa [#allocation3], 1 }

</bundles_post_ra>
